<compile_context>
chip_gen: v7x
topology: tpu7x:2x2x1
jax: 0.10.0
libtpu: 0.0.40
codegen_flags: <defaults>
</compile_context>

<pallas_src>
import functools

import numpy as np
import jax
import jax.numpy as jnp
from jax.experimental import pallas as pl
from jax.experimental.pallas import tpu as pltpu

D_MODEL = 128
N_HEADS = 4
D_HEAD = D_MODEL // N_HEADS
D_FF = 256
VOCAB = 256
EPS = 1e-6
DEC_MAX = 16          # max decoder prefix (start token + generated tokens)
ENC_MAX = 16          # fixed (padded) prompt bucket -> single compile per config
NEG_INF = -1e9

# SMEM state slots for the fused generation kernel
_CUR_LEN, _DONE, _N_NEW, _LAST_TOK = 0, 1, 2, 3


# --------------------------- in-kernel helpers ------------------------------

def _rms(x, w_row):
    """T5 LayerNorm (RMSNorm, no mean subtraction, no bias). x f32 (L,D)."""
    var = jnp.mean(x * x, axis=-1, keepdims=True)
    return x * jax.lax.rsqrt(var + EPS) * w_row


def _mm(a_f32, w_bf16):
    """bf16 MXU matmul with f32 accumulation."""
    return jnp.dot(a_f32.astype(jnp.bfloat16), w_bf16,
                   preferred_element_type=jnp.float32)


def _mh_attn(q, k, v, wo_ref, mask):
    """Multi-head attention with heads concatenated along lanes and a single
    K=128 output-projection matmul.

    q: (Lq, D) f32, k/v: (Lk, D) f32, wo_ref: (D, D) bf16 ref,
    mask: broadcastable to (Lq, Lk) f32 or None.
    T5 attention does NOT scale scores by 1/sqrt(head_dim).
    """
    parts = []
    for h in range(N_HEADS):
        sl = slice(h * D_HEAD, (h + 1) * D_HEAD)
        s = jax.lax.dot_general(q[:, sl].astype(jnp.bfloat16),
                                k[:, sl].astype(jnp.bfloat16),
                                (((1,), (1,)), ((), ())),
                                preferred_element_type=jnp.float32)   # (Lq, Lk)
        if mask is not None:
            s = s + mask
        s = s - jnp.max(s, axis=-1, keepdims=True)
        p = jnp.exp(s)
        p = p * pl.reciprocal(jnp.sum(p, axis=-1, keepdims=True), approx=True)
        parts.append(jnp.dot(p.astype(jnp.bfloat16), v[:, sl].astype(jnp.bfloat16),
                             preferred_element_type=jnp.float32))     # (Lq, Dh)
    attn = jnp.concatenate(parts, axis=-1)                            # (Lq, D)
    return jnp.dot(attn.astype(jnp.bfloat16), wo_ref[...],
                   preferred_element_type=jnp.float32)                # (Lq, D)


def _argmax_lanes(x, lane_iota):
    """First-occurrence argmax over the lane axis of a (1, N) f32 value,
    returned as an int32 scalar (via f32 min-reduce, indices < 2**24)."""
    m = jnp.max(x)
    idx_f = jnp.where(x == m, lane_iota.astype(jnp.float32), float(VOCAB))
    return jnp.min(idx_f).astype(jnp.int32)


# ----------------------- fused encoder-prep kernel ---------------------------

def _encoder_kernel(enc_len_ref, ids_ref, embed_ref, lns_ref, wqkv_ref, wo_ref,
                    wi_ref, woff_ref, wk2_ref, wv2_ref,
                    enc_ref, kc_ref, vc_ref):
    # TODO(synk): T5 relative-position attention bias omitted in this synthetic model.
    enc_len = enc_len_ref[0]
    S = ENC_MAX
    ids = ids_ref[...]                                                # (S, 1)
    onehot = (ids == jax.lax.broadcasted_iota(jnp.int32, (S, VOCAB), 1))
    x = jnp.dot(onehot.astype(jnp.bfloat16), embed_ref[...],
                preferred_element_type=jnp.float32)                   # (S, D)
    lns = lns_ref[...]                                                # (3, D)

    # bidirectional self-attention; padded key positions masked out
    kmask = jnp.where(
        jax.lax.broadcasted_iota(jnp.int32, (S, S), 1) < enc_len, 0.0, NEG_INF)
    h = _rms(x, lns[0:1, :])
    qkv = _mm(h, wqkv_ref[...])                                       # (S, 3D)
    x = x + _mh_attn(qkv[:, :D_MODEL], qkv[:, D_MODEL:2 * D_MODEL],
                     qkv[:, 2 * D_MODEL:], wo_ref, kmask)

    # FFN (ReLU)
    h = _rms(x, lns[1:2, :])
    ff = jnp.maximum(_mm(h, wi_ref[...]), 0.0)
    x = x + _mm(ff, woff_ref[...])

    enc = _rms(x, lns[2:3, :])
    enc_ref[...] = enc
    # cross-attention K/V cache: computed once per prompt, reused every step
    kc_ref[...] = _mm(enc, wk2_ref[...])
    vc_ref[...] = _mm(enc, wv2_ref[...])


def encoder_prep(params, padded_ids, enc_len):
    pe, pd = params["enc"], params["dec"]
    ids2d = padded_ids.reshape(ENC_MAX, 1).astype(jnp.int32)
    full = lambda i, el: (0, 0)
    grid_spec = pltpu.PrefetchScalarGridSpec(
        num_scalar_prefetch=1,
        grid=(1,),
        in_specs=[pl.BlockSpec((ENC_MAX, 1), full),
                  pl.BlockSpec((VOCAB, D_MODEL), full),
                  pl.BlockSpec((3, D_MODEL), full),
                  pl.BlockSpec((D_MODEL, 3 * D_MODEL), full),
                  pl.BlockSpec((D_MODEL, D_MODEL), full),
                  pl.BlockSpec((D_MODEL, D_FF), full),
                  pl.BlockSpec((D_FF, D_MODEL), full),
                  pl.BlockSpec((D_MODEL, D_MODEL), full),
                  pl.BlockSpec((D_MODEL, D_MODEL), full)],
        out_specs=(pl.BlockSpec((ENC_MAX, D_MODEL), full),
                   pl.BlockSpec((ENC_MAX, D_MODEL), full),
                   pl.BlockSpec((ENC_MAX, D_MODEL), full)),
    )
    return pl.pallas_call(
        _encoder_kernel,
        out_shape=(jax.ShapeDtypeStruct((ENC_MAX, D_MODEL), jnp.float32),
                   jax.ShapeDtypeStruct((ENC_MAX, D_MODEL), jnp.float32),
                   jax.ShapeDtypeStruct((ENC_MAX, D_MODEL), jnp.float32)),
        grid_spec=grid_spec,
        compiler_params=pltpu.CompilerParams(dimension_semantics=("arbitrary",)),
    )(enc_len, ids2d, params["embed"], pe["lns"], pe["wqkv"], pe["wo"],
      pe["wi"], pe["wo_ff"], pd["wk2"], pd["wv2"])


# ------------------ fused generation-loop kernel (one call) ------------------

def _generate_kernel(enc_len_ref,
                     embed_ref, kc_ref, vc_ref, lns_ref,
                     wqkv1_ref, wo1_ref, wq2_ref, wo2_ref,
                     wi_ref, woff_ref, lmhead_ref,
                     logits_ref, tokens_ref, counts_ref,
                     kcache_ref, vcache_ref, seen_ref, state_ref,
                     *, temperature, repetition_penalty):
    step = pl.program_id(0)
    max_len = logits_ref.shape[0]
    temp_div = temperature if temperature > 0 else 1.0

    lane_v = jax.lax.broadcasted_iota(jnp.int32, (1, VOCAB), 1)
    lane_dec = jax.lax.broadcasted_iota(jnp.int32, (1, DEC_MAX), 1)
    lane_enc = jax.lax.broadcasted_iota(jnp.int32, (1, ENC_MAX), 1)
    row_dec = jax.lax.broadcasted_iota(jnp.int32, (DEC_MAX, 1), 0)
    row_ml = jax.lax.broadcasted_iota(jnp.int32, (max_len, 1), 0)

    @pl.when(step == 0)
    def _init():
        state_ref[_CUR_LEN] = 1
        state_ref[_DONE] = 0
        state_ref[_N_NEW] = 0
        state_ref[_LAST_TOK] = 0                       # decoder start token
        seen_ref[...] = (lane_v == 0).astype(jnp.float32)   # token 0 in the set
        kcache_ref[...] = jnp.zeros_like(kcache_ref)
        vcache_ref[...] = jnp.zeros_like(vcache_ref)
        tokens_ref[...] = jnp.zeros_like(tokens_ref)
        logits_ref[...] = jnp.zeros_like(logits_ref)

    @pl.when(state_ref[_DONE] == 0)
    def _step():
        cur_len = state_ref[_CUR_LEN]
        last_tok = state_ref[_LAST_TOK]
        pos = cur_len - 1
        lns = lns_ref[...]                             # (4, D)

        # ---- embedding of the single new token (one-hot row @ table) ----
        onehot = (lane_v == last_tok).astype(jnp.bfloat16)          # (1, VOCAB)
        x = jnp.dot(onehot, embed_ref[...],
                    preferred_element_type=jnp.float32)             # (1, D)

        # ---- self-attention (incremental, K/V cached in VMEM scratch) ----
        h = _rms(x, lns[0:1, :])
        qkv = _mm(h, wqkv1_ref[...])                                 # (1, 3D)
        q1 = qkv[:, :D_MODEL]
        k_new = qkv[:, D_MODEL:2 * D_MODEL]
        v_new = qkv[:, 2 * D_MODEL:]
        is_pos = (row_dec == pos)
        kcache_ref[...] = jnp.where(is_pos, k_new, kcache_ref[...])
        vcache_ref[...] = jnp.where(is_pos, v_new, vcache_ref[...])
        self_mask = jnp.where(lane_dec < cur_len, 0.0, NEG_INF)      # (1, L)
        x = x + _mh_attn(q1, kcache_ref[...], vcache_ref[...], wo1_ref, self_mask)

        # ---- cross-attention (K/V precomputed once by the encoder kernel) ----
        h = _rms(x, lns[1:2, :])
        q2 = _mm(h, wq2_ref[...])
        cross_mask = jnp.where(lane_enc < enc_len_ref[0], 0.0, NEG_INF)
        x = x + _mh_attn(q2, kc_ref[...], vc_ref[...], wo2_ref, cross_mask)

        # ---- FFN (ReLU) ----
        h = _rms(x, lns[2:3, :])
        ff = jnp.maximum(_mm(h, wi_ref[...]), 0.0)
        x = x + _mm(ff, woff_ref[...])

        # ---- final norm + onnxt5 decoder_with_lm_head scale + LM head ----
        x = _rms(x, lns[3:4, :]) * (D_MODEL ** -0.5)
        logits = _mm(x, lmhead_ref[...])                             # (1, VOCAB)

        nt = logits / temp_div
        is_eos = _argmax_lanes(nt, lane_v) == 1        # EOS check on UNpenalized logits

        @pl.when(jnp.logical_not(is_eos))
        def _append():
            # repetition penalty over the set of tokens generated so far
            penalized = jnp.where(seen_ref[...] > 0.5,
                                  nt / repetition_penalty, nt)
            # TODO(synk): top_k/top_p multinomial sampling (temperature>0) not
            # implemented; greedy argmax fallback.
            next_tok = _argmax_lanes(penalized, lane_v)

            # stored logits are the penalized ones (reference mutates in place)
            logits_ref[...] = jnp.where(row_ml == step, penalized, logits_ref[...])
            tokens_ref[...] = jnp.where(lane_dec == cur_len, next_tok,
                                        tokens_ref[...])
            seen_ref[...] = jnp.where(lane_v == next_tok, 1.0, seen_ref[...])
            state_ref[_CUR_LEN] = cur_len + 1
            state_ref[_N_NEW] = state_ref[_N_NEW] + 1
            state_ref[_LAST_TOK] = next_tok

        @pl.when(is_eos)
        def _stop():
            state_ref[_DONE] = 1

    # counts = [n_new, cur_len, done, 0...]; resident block, written back once.
    cidx = jax.lax.broadcasted_iota(jnp.int32, (1, 8), 1)
    counts_ref[...] = jnp.where(
        cidx == 0, state_ref[_N_NEW],
        jnp.where(cidx == 1, state_ref[_CUR_LEN],
                  jnp.where(cidx == 2, state_ref[_DONE], 0)))


def _build_generate(max_length, temperature, repetition_penalty):
    kern = functools.partial(_generate_kernel, temperature=temperature,
                             repetition_penalty=repetition_penalty)
    full = lambda i, el: (0, 0)
    grid_spec = pltpu.PrefetchScalarGridSpec(
        num_scalar_prefetch=1,
        grid=(max_length,),
        in_specs=[
            pl.BlockSpec((VOCAB, D_MODEL), full),        # embed
            pl.BlockSpec((ENC_MAX, D_MODEL), full),      # k_cross
            pl.BlockSpec((ENC_MAX, D_MODEL), full),      # v_cross
            pl.BlockSpec((4, D_MODEL), full),            # dec lns
            pl.BlockSpec((D_MODEL, 3 * D_MODEL), full),  # wqkv1
            pl.BlockSpec((D_MODEL, D_MODEL), full),      # wo1
            pl.BlockSpec((D_MODEL, D_MODEL), full),      # wq2
            pl.BlockSpec((D_MODEL, D_MODEL), full),      # wo2
            pl.BlockSpec((D_MODEL, D_FF), full),         # wi
            pl.BlockSpec((D_FF, D_MODEL), full),         # wo_ff
            pl.BlockSpec((D_MODEL, VOCAB), full),        # lm_head
        ],
        out_specs=(pl.BlockSpec((max_length, VOCAB), full),   # per-step logits
                   pl.BlockSpec((1, DEC_MAX), full),          # generated tokens
                   pl.BlockSpec((1, 8), full)),               # [n_new, cur_len, done]
        scratch_shapes=[pltpu.VMEM((DEC_MAX, D_MODEL), jnp.float32),   # K cache
                        pltpu.VMEM((DEC_MAX, D_MODEL), jnp.float32),   # V cache
                        pltpu.VMEM((1, VOCAB), jnp.float32),           # seen mask
                        pltpu.SMEM((4,), jnp.int32)],                  # state
    )
    call = pl.pallas_call(
        kern,
        out_shape=(jax.ShapeDtypeStruct((max_length, VOCAB), jnp.float32),
                   jax.ShapeDtypeStruct((1, DEC_MAX), jnp.int32),
                   jax.ShapeDtypeStruct((1, 8), jnp.int32)),
        grid_spec=grid_spec,
        compiler_params=pltpu.CompilerParams(dimension_semantics=("arbitrary",)),
    )

    def run(dec, embed, k_cross, v_cross, enc_len):
        return call(enc_len, embed, k_cross, v_cross, dec["lns"],
                    dec["wqkv1"], dec["wo1"], dec["wq2"], dec["wo2"],
                    dec["wi"], dec["wo_ff"], dec["lm_head"])

    return jax.jit(run)


# ------------------------------- parameters ----------------------------------

def init_params(key):
    def nrm(k, shape, scale=0.05):
        return (scale * jax.random.normal(k, shape)).astype(jnp.float32)

    bf = lambda a: a.astype(jnp.bfloat16)
    ks = iter(jax.random.split(key, 32))

    def qkv():
        return bf(jnp.concatenate(
            [nrm(next(ks), (D_MODEL, D_MODEL)) for _ in range(3)], axis=1))

    embed = bf(nrm(next(ks), (VOCAB, D_MODEL), 1.0))
    enc = {
        "lns": jnp.ones((3, D_MODEL), jnp.float32),
        "wqkv": qkv(),
        "wo": bf(nrm(next(ks), (D_MODEL, D_MODEL))),
        "wi": bf(nrm(next(ks), (D_MODEL, D_FF))),
        "wo_ff": bf(nrm(next(ks), (D_FF, D_MODEL))),
    }
    dec = {
        "lns": jnp.ones((4, D_MODEL), jnp.float32),
        "wqkv1": qkv(),
        "wo1": bf(nrm(next(ks), (D_MODEL, D_MODEL))),
        "wq2": bf(nrm(next(ks), (D_MODEL, D_MODEL))),
        "wk2": bf(nrm(next(ks), (D_MODEL, D_MODEL))),
        "wv2": bf(nrm(next(ks), (D_MODEL, D_MODEL))),
        "wo2": bf(nrm(next(ks), (D_MODEL, D_MODEL))),
        "wi": bf(nrm(next(ks), (D_MODEL, D_FF))),
        "wo_ff": bf(nrm(next(ks), (D_FF, D_MODEL))),
        "lm_head": bf(nrm(next(ks), (D_MODEL, VOCAB))),
    }
    return {"embed": embed, "enc": enc, "dec": dec}


# ------------------------- generation wrapper (module) -----------------------

class GenerativeT5Pallas:
    """Mirrors GenerativeT5_pytorch.forward's greedy generation loop."""

    def __init__(self, params):
        self.params = params
        self._encode = jax.jit(encoder_prep)
        self._gen_cache = {}

    def encode(self, prompt_ids):
        prompt_ids = jnp.asarray(prompt_ids, jnp.int32)
        S = int(prompt_ids.shape[0])
        assert S <= ENC_MAX, "increase ENC_MAX for longer prompts"
        padded = jnp.zeros((ENC_MAX,), jnp.int32).at[:S].set(prompt_ids)
        enc_len = jnp.array([S], jnp.int32)
        enc_out, k_cross, v_cross = self._encode(self.params, padded, enc_len)
        return enc_out, k_cross, v_cross, enc_len

    def _get_generate(self, max_length, temperature, repetition_penalty):
        key = (int(max_length), float(temperature), float(repetition_penalty))
        if key not in self._gen_cache:
            self._gen_cache[key] = _build_generate(*key)
        return self._gen_cache[key]

    def forward(self, prompt_ids, max_length, temperature=1.0,
                repetition_penalty=1.0, top_k=50, top_p=0,
                max_context_length=512):
        # TODO(synk): HF tokenizer not modeled; prompt_ids stand in for tokenizer output.
        assert max_length + 1 <= DEC_MAX, "increase DEC_MAX for longer generations"
        prompt_ids = jnp.asarray(prompt_ids, jnp.int32)[: max_context_length - 1]
        _, k_cross, v_cross, enc_len = self.encode(prompt_ids)

        gen = self._get_generate(max_length, temperature, repetition_penalty)
        logits_all, tokens, counts = gen(self.params["dec"], self.params["embed"],
                                         k_cross, v_cross, enc_len)
        logits_all, tokens, counts = jax.device_get((logits_all, tokens, counts))
        n = int(counts[0, 0])
        new_tokens = [int(t) for t in np.asarray(tokens)[0, 1:1 + n]]
        new_logits = [np.asarray(logits_all[i]) for i in range(n)]
        return new_tokens, new_logits


# ----------------------------------- main ------------------------------------

if __name__ == "__main__":
    root = jax.random.PRNGKey(0)
    k_params, k_prompt = jax.random.split(root)
    params = init_params(k_params)
    model = GenerativeT5Pallas(params)

    # Synthetic "tokenized prompt" (stand-in for the HF tokenizer output).
    prompt_ids = jax.random.randint(k_prompt, (8,), 2, VOCAB, dtype=jnp.int32)

    # Run the fused encoder / cross-KV kernel once and block on it.
    enc_out, k_cross, v_cross, enc_len = model.encode(prompt_ids)
    jax.block_until_ready((enc_out, k_cross, v_cross))

    tokens, logits = model.forward(prompt_ids, max_length=4, temperature=0.0,
                                   repetition_penalty=1.2)
    assert len(logits) <= 4 and all(l.shape == (VOCAB,) for l in logits)
    print("KERNEL_OK")
</pallas_src>

<mosaic_0001>
module attributes {stable_mosaic.version = 11 : i64} {
  func.func @_encoder_kernel(%arg0: i32, %arg1: memref<1xi32, #tpu.memory_space<smem>>, %arg2: memref<16x1xi32, #tpu.memory_space<vmem>>, %arg3: memref<256x128xbf16, #tpu.memory_space<vmem>>, %arg4: memref<3x128xf32, #tpu.memory_space<vmem>>, %arg5: memref<128x384xbf16, #tpu.memory_space<vmem>>, %arg6: memref<128x128xbf16, #tpu.memory_space<vmem>>, %arg7: memref<128x256xbf16, #tpu.memory_space<vmem>>, %arg8: memref<256x128xbf16, #tpu.memory_space<vmem>>, %arg9: memref<128x128xbf16, #tpu.memory_space<vmem>>, %arg10: memref<128x128xbf16, #tpu.memory_space<vmem>>, %arg11: memref<16x128xf32, #tpu.memory_space<vmem>>, %arg12: memref<16x128xf32, #tpu.memory_space<vmem>>, %arg13: memref<16x128xf32, #tpu.memory_space<vmem>>) attributes {dimension_semantics = [#tpu.dimension_semantics<arbitrary>], iteration_bounds = array<i64: 1>, scalar_prefetch = 1 : i64, scratch_operands = 0 : i64, tpu.core_type = #tpu.core_type<tc>, window_params = [{pipeline_mode = #tpu.pipeline_mode<synchronous>, transform_indices = @transform_0, window_bounds = array<i64: 16, 1>}, {pipeline_mode = #tpu.pipeline_mode<synchronous>, transform_indices = @transform_1, window_bounds = array<i64: 256, 128>}, {pipeline_mode = #tpu.pipeline_mode<synchronous>, transform_indices = @transform_2, window_bounds = array<i64: 3, 128>}, {pipeline_mode = #tpu.pipeline_mode<synchronous>, transform_indices = @transform_3, window_bounds = array<i64: 128, 384>}, {pipeline_mode = #tpu.pipeline_mode<synchronous>, transform_indices = @transform_4, window_bounds = array<i64: 128, 128>}, {pipeline_mode = #tpu.pipeline_mode<synchronous>, transform_indices = @transform_5, window_bounds = array<i64: 128, 256>}, {pipeline_mode = #tpu.pipeline_mode<synchronous>, transform_indices = @transform_6, window_bounds = array<i64: 256, 128>}, {pipeline_mode = #tpu.pipeline_mode<synchronous>, transform_indices = @transform_7, window_bounds = array<i64: 128, 128>}, {pipeline_mode = #tpu.pipeline_mode<synchronous>, transform_indices = @transform_8, window_bounds = array<i64: 128, 128>}, {pipeline_mode = #tpu.pipeline_mode<synchronous>, transform_indices = @transform_9, window_bounds = array<i64: 16, 128>}, {pipeline_mode = #tpu.pipeline_mode<synchronous>, transform_indices = @transform_10, window_bounds = array<i64: 16, 128>}, {pipeline_mode = #tpu.pipeline_mode<synchronous>, transform_indices = @transform_11, window_bounds = array<i64: 16, 128>}]} {
    %c0 = arith.constant 0 : index
    %0 = memref.load %arg1[%c0] : memref<1xi32, #tpu.memory_space<smem>>
    %c0_0 = arith.constant 0 : index
    %c0_1 = arith.constant 0 : index
    %1 = vector.load %arg2[%c0_0, %c0_1] : memref<16x1xi32, #tpu.memory_space<vmem>>, vector<16x1xi32>
    %2 = tpu.iota {dimensions = array<i32: 1>} : vector<16x256xi32>
    %3 = vector.broadcast %1 : vector<16x1xi32> to vector<16x256xi32>
    %4 = arith.cmpi eq, %3, %2 : vector<16x256xi32>
    %5 = arith.extui %4 : vector<16x256xi1> to vector<16x256xi32>
    %6 = arith.sitofp %5 : vector<16x256xi32> to vector<16x256xf32>
    %7 = arith.truncf %6 : vector<16x256xf32> to vector<16x256xbf16>
    %c0_2 = arith.constant 0 : index
    %c0_3 = arith.constant 0 : index
    %8 = vector.load %arg3[%c0_2, %c0_3] : memref<256x128xbf16, #tpu.memory_space<vmem>>, vector<256x128xbf16>
    %cst = arith.constant dense<0.000000e+00> : vector<16x128xf32>
    %9 = tpu.matmul %7, %8, %cst {dimension_numbers = #tpu.dot_dimension_numbers<[1], [0], [0], [1], [0, 0, 1, 1], [], []>} : vector<16x256xbf16>, vector<256x128xbf16>, vector<16x128xf32> -> vector<16x128xf32>
    %c0_4 = arith.constant 0 : index
    %c0_5 = arith.constant 0 : index
    %10 = vector.load %arg4[%c0_4, %c0_5] : memref<3x128xf32, #tpu.memory_space<vmem>>, vector<3x128xf32>
    %11 = tpu.iota {dimensions = array<i32: 1>} : vector<16x16xi32>
    %12 = vector.broadcast %0 : i32 to vector<16x16xi32>
    %13 = arith.cmpi slt, %11, %12 : vector<16x16xi32>
    %cst_6 = arith.constant 0.000000e+00 : f32
    %cst_7 = arith.constant -1.000000e+09 : f32
    %14 = vector.broadcast %cst_6 : f32 to vector<16x16xf32>
    %15 = vector.broadcast %cst_7 : f32 to vector<16x16xf32>
    %16 = arith.select %13, %14, %15 : vector<16x16xi1>, vector<16x16xf32>
    %17 = vector.extract_strided_slice %10 {offsets = [0, 0], sizes = [1, 128], strides = [1, 1]} : vector<3x128xf32> to vector<1x128xf32>
    %18 = arith.mulf %9, %9 : vector<16x128xf32>
    %cst_8 = arith.constant dense<0.000000e+00> : vector<16xf32>
    %19 = vector.multi_reduction <add>, %18, %cst_8 [1] : vector<16x128xf32> to vector<16xf32>
    %20 = vector.shape_cast %19 : vector<16xf32> to vector<16x1xf32>
    %cst_9 = arith.constant 1.280000e+02 : f32
    %21 = vector.broadcast %cst_9 : f32 to vector<16x1xf32>
    %22 = arith.divf %20, %21 : vector<16x1xf32>
    %cst_10 = arith.constant 9.99999997E-7 : f32
    %23 = vector.broadcast %cst_10 : f32 to vector<16x1xf32>
    %24 = arith.addf %22, %23 : vector<16x1xf32>
    %25 = math.rsqrt %24 : vector<16x1xf32>
    %26 = vector.broadcast %25 : vector<16x1xf32> to vector<16x128xf32>
    %27 = arith.mulf %9, %26 : vector<16x128xf32>
    %28 = vector.broadcast %17 : vector<1x128xf32> to vector<16x128xf32>
    %29 = arith.mulf %27, %28 : vector<16x128xf32>
    %c0_11 = arith.constant 0 : index
    %c0_12 = arith.constant 0 : index
    %30 = vector.load %arg5[%c0_11, %c0_12] : memref<128x384xbf16, #tpu.memory_space<vmem>>, vector<128x384xbf16>
    %31 = arith.truncf %29 : vector<16x128xf32> to vector<16x128xbf16>
    %cst_13 = arith.constant dense<0.000000e+00> : vector<16x384xf32>
    %32 = tpu.matmul %31, %30, %cst_13 {dimension_numbers = #tpu.dot_dimension_numbers<[1], [0], [0], [1], [0, 0, 1, 1], [], []>} : vector<16x128xbf16>, vector<128x384xbf16>, vector<16x384xf32> -> vector<16x384xf32>
    %33 = vector.extract_strided_slice %32 {offsets = [0, 0], sizes = [16, 128], strides = [1, 1]} : vector<16x384xf32> to vector<16x128xf32>
    %34 = vector.extract_strided_slice %32 {offsets = [0, 128], sizes = [16, 128], strides = [1, 1]} : vector<16x384xf32> to vector<16x128xf32>
    %35 = vector.extract_strided_slice %32 {offsets = [0, 256], sizes = [16, 128], strides = [1, 1]} : vector<16x384xf32> to vector<16x128xf32>
    %36 = vector.extract_strided_slice %33 {offsets = [0, 0], sizes = [16, 32], strides = [1, 1]} : vector<16x128xf32> to vector<16x32xf32>
    %37 = arith.truncf %36 : vector<16x32xf32> to vector<16x32xbf16>
    %38 = vector.extract_strided_slice %34 {offsets = [0, 0], sizes = [16, 32], strides = [1, 1]} : vector<16x128xf32> to vector<16x32xf32>
    %39 = arith.truncf %38 : vector<16x32xf32> to vector<16x32xbf16>
    %cst_14 = arith.constant dense<0.000000e+00> : vector<16x16xf32>
    %40 = tpu.matmul %37, %39, %cst_14 {dimension_numbers = #tpu.dot_dimension_numbers<[1], [1], [0], [0], [0, 0, 1, 0], [], []>} : vector<16x32xbf16>, vector<16x32xbf16>, vector<16x16xf32> -> vector<16x16xf32>
    %41 = arith.addf %40, %16 : vector<16x16xf32>
    %cst_15 = arith.constant dense<0xFF800000> : vector<16xf32>
    %42 = vector.multi_reduction <maximumf>, %41, %cst_15 [1] : vector<16x16xf32> to vector<16xf32>
    %43 = vector.shape_cast %42 : vector<16xf32> to vector<16x1xf32>
    %44 = vector.broadcast %43 : vector<16x1xf32> to vector<16x16xf32>
    %45 = arith.subf %41, %44 : vector<16x16xf32>
    %46 = math.exp %45 : vector<16x16xf32>
    %cst_16 = arith.constant dense<0.000000e+00> : vector<16xf32>
    %47 = vector.multi_reduction <add>, %46, %cst_16 [1] : vector<16x16xf32> to vector<16xf32>
    %48 = vector.shape_cast %47 : vector<16xf32> to vector<16x1xf32>
    %49 = tpu.reciprocal %48 {approx = true} : vector<16x1xf32> -> vector<16x1xf32>
    %50 = vector.broadcast %49 : vector<16x1xf32> to vector<16x16xf32>
    %51 = arith.mulf %46, %50 : vector<16x16xf32>
    %52 = arith.truncf %51 : vector<16x16xf32> to vector<16x16xbf16>
    %53 = vector.extract_strided_slice %35 {offsets = [0, 0], sizes = [16, 32], strides = [1, 1]} : vector<16x128xf32> to vector<16x32xf32>
    %54 = arith.truncf %53 : vector<16x32xf32> to vector<16x32xbf16>
    %cst_17 = arith.constant dense<0.000000e+00> : vector<16x32xf32>
    %55 = tpu.matmul %52, %54, %cst_17 {dimension_numbers = #tpu.dot_dimension_numbers<[1], [0], [0], [1], [0, 0, 1, 1], [], []>} : vector<16x16xbf16>, vector<16x32xbf16>, vector<16x32xf32> -> vector<16x32xf32>
    %56 = vector.extract_strided_slice %33 {offsets = [0, 32], sizes = [16, 32], strides = [1, 1]} : vector<16x128xf32> to vector<16x32xf32>
    %57 = arith.truncf %56 : vector<16x32xf32> to vector<16x32xbf16>
    %58 = vector.extract_strided_slice %34 {offsets = [0, 32], sizes = [16, 32], strides = [1, 1]} : vector<16x128xf32> to vector<16x32xf32>
    %59 = arith.truncf %58 : vector<16x32xf32> to vector<16x32xbf16>
    %cst_18 = arith.constant dense<0.000000e+00> : vector<16x16xf32>
    %60 = tpu.matmul %57, %59, %cst_18 {dimension_numbers = #tpu.dot_dimension_numbers<[1], [1], [0], [0], [0, 0, 1, 0], [], []>} : vector<16x32xbf16>, vector<16x32xbf16>, vector<16x16xf32> -> vector<16x16xf32>
    %61 = arith.addf %60, %16 : vector<16x16xf32>
    %cst_19 = arith.constant dense<0xFF800000> : vector<16xf32>
    %62 = vector.multi_reduction <maximumf>, %61, %cst_19 [1] : vector<16x16xf32> to vector<16xf32>
    %63 = vector.shape_cast %62 : vector<16xf32> to vector<16x1xf32>
    %64 = vector.broadcast %63 : vector<16x1xf32> to vector<16x16xf32>
    %65 = arith.subf %61, %64 : vector<16x16xf32>
    %66 = math.exp %65 : vector<16x16xf32>
    %cst_20 = arith.constant dense<0.000000e+00> : vector<16xf32>
    %67 = vector.multi_reduction <add>, %66, %cst_20 [1] : vector<16x16xf32> to vector<16xf32>
    %68 = vector.shape_cast %67 : vector<16xf32> to vector<16x1xf32>
    %69 = tpu.reciprocal %68 {approx = true} : vector<16x1xf32> -> vector<16x1xf32>
    %70 = vector.broadcast %69 : vector<16x1xf32> to vector<16x16xf32>
    %71 = arith.mulf %66, %70 : vector<16x16xf32>
    %72 = arith.truncf %71 : vector<16x16xf32> to vector<16x16xbf16>
    %73 = vector.extract_strided_slice %35 {offsets = [0, 32], sizes = [16, 32], strides = [1, 1]} : vector<16x128xf32> to vector<16x32xf32>
    %74 = arith.truncf %73 : vector<16x32xf32> to vector<16x32xbf16>
    %cst_21 = arith.constant dense<0.000000e+00> : vector<16x32xf32>
    %75 = tpu.matmul %72, %74, %cst_21 {dimension_numbers = #tpu.dot_dimension_numbers<[1], [0], [0], [1], [0, 0, 1, 1], [], []>} : vector<16x16xbf16>, vector<16x32xbf16>, vector<16x32xf32> -> vector<16x32xf32>
    %76 = vector.extract_strided_slice %33 {offsets = [0, 64], sizes = [16, 32], strides = [1, 1]} : vector<16x128xf32> to vector<16x32xf32>
    %77 = arith.truncf %76 : vector<16x32xf32> to vector<16x32xbf16>
    %78 = vector.extract_strided_slice %34 {offsets = [0, 64], sizes = [16, 32], strides = [1, 1]} : vector<16x128xf32> to vector<16x32xf32>
    %79 = arith.truncf %78 : vector<16x32xf32> to vector<16x32xbf16>
    %cst_22 = arith.constant dense<0.000000e+00> : vector<16x16xf32>
    %80 = tpu.matmul %77, %79, %cst_22 {dimension_numbers = #tpu.dot_dimension_numbers<[1], [1], [0], [0], [0, 0, 1, 0], [], []>} : vector<16x32xbf16>, vector<16x32xbf16>, vector<16x16xf32> -> vector<16x16xf32>
    %81 = arith.addf %80, %16 : vector<16x16xf32>
    %cst_23 = arith.constant dense<0xFF800000> : vector<16xf32>
    %82 = vector.multi_reduction <maximumf>, %81, %cst_23 [1] : vector<16x16xf32> to vector<16xf32>
    %83 = vector.shape_cast %82 : vector<16xf32> to vector<16x1xf32>
    %84 = vector.broadcast %83 : vector<16x1xf32> to vector<16x16xf32>
    %85 = arith.subf %81, %84 : vector<16x16xf32>
    %86 = math.exp %85 : vector<16x16xf32>
    %cst_24 = arith.constant dense<0.000000e+00> : vector<16xf32>
    %87 = vector.multi_reduction <add>, %86, %cst_24 [1] : vector<16x16xf32> to vector<16xf32>
    %88 = vector.shape_cast %87 : vector<16xf32> to vector<16x1xf32>
    %89 = tpu.reciprocal %88 {approx = true} : vector<16x1xf32> -> vector<16x1xf32>
    %90 = vector.broadcast %89 : vector<16x1xf32> to vector<16x16xf32>
    %91 = arith.mulf %86, %90 : vector<16x16xf32>
    %92 = arith.truncf %91 : vector<16x16xf32> to vector<16x16xbf16>
    %93 = vector.extract_strided_slice %35 {offsets = [0, 64], sizes = [16, 32], strides = [1, 1]} : vector<16x128xf32> to vector<16x32xf32>
    %94 = arith.truncf %93 : vector<16x32xf32> to vector<16x32xbf16>
    %cst_25 = arith.constant dense<0.000000e+00> : vector<16x32xf32>
    %95 = tpu.matmul %92, %94, %cst_25 {dimension_numbers = #tpu.dot_dimension_numbers<[1], [0], [0], [1], [0, 0, 1, 1], [], []>} : vector<16x16xbf16>, vector<16x32xbf16>, vector<16x32xf32> -> vector<16x32xf32>
    %96 = vector.extract_strided_slice %33 {offsets = [0, 96], sizes = [16, 32], strides = [1, 1]} : vector<16x128xf32> to vector<16x32xf32>
    %97 = arith.truncf %96 : vector<16x32xf32> to vector<16x32xbf16>
    %98 = vector.extract_strided_slice %34 {offsets = [0, 96], sizes = [16, 32], strides = [1, 1]} : vector<16x128xf32> to vector<16x32xf32>
    %99 = arith.truncf %98 : vector<16x32xf32> to vector<16x32xbf16>
    %cst_26 = arith.constant dense<0.000000e+00> : vector<16x16xf32>
    %100 = tpu.matmul %97, %99, %cst_26 {dimension_numbers = #tpu.dot_dimension_numbers<[1], [1], [0], [0], [0, 0, 1, 0], [], []>} : vector<16x32xbf16>, vector<16x32xbf16>, vector<16x16xf32> -> vector<16x16xf32>
    %101 = arith.addf %100, %16 : vector<16x16xf32>
    %cst_27 = arith.constant dense<0xFF800000> : vector<16xf32>
    %102 = vector.multi_reduction <maximumf>, %101, %cst_27 [1] : vector<16x16xf32> to vector<16xf32>
    %103 = vector.shape_cast %102 : vector<16xf32> to vector<16x1xf32>
    %104 = vector.broadcast %103 : vector<16x1xf32> to vector<16x16xf32>
    %105 = arith.subf %101, %104 : vector<16x16xf32>
    %106 = math.exp %105 : vector<16x16xf32>
    %cst_28 = arith.constant dense<0.000000e+00> : vector<16xf32>
    %107 = vector.multi_reduction <add>, %106, %cst_28 [1] : vector<16x16xf32> to vector<16xf32>
    %108 = vector.shape_cast %107 : vector<16xf32> to vector<16x1xf32>
    %109 = tpu.reciprocal %108 {approx = true} : vector<16x1xf32> -> vector<16x1xf32>
    %110 = vector.broadcast %109 : vector<16x1xf32> to vector<16x16xf32>
    %111 = arith.mulf %106, %110 : vector<16x16xf32>
    %112 = arith.truncf %111 : vector<16x16xf32> to vector<16x16xbf16>
    %113 = vector.extract_strided_slice %35 {offsets = [0, 96], sizes = [16, 32], strides = [1, 1]} : vector<16x128xf32> to vector<16x32xf32>
    %114 = arith.truncf %113 : vector<16x32xf32> to vector<16x32xbf16>
    %cst_29 = arith.constant dense<0.000000e+00> : vector<16x32xf32>
    %115 = tpu.matmul %112, %114, %cst_29 {dimension_numbers = #tpu.dot_dimension_numbers<[1], [0], [0], [1], [0, 0, 1, 1], [], []>} : vector<16x16xbf16>, vector<16x32xbf16>, vector<16x32xf32> -> vector<16x32xf32>
    %116 = tpu.concatenate %55, %75, %95, %115 in 1 : vector<16x32xf32>, vector<16x32xf32>, vector<16x32xf32>, vector<16x32xf32> -> vector<16x128xf32>
    %117 = arith.truncf %116 : vector<16x128xf32> to vector<16x128xbf16>
    %c0_30 = arith.constant 0 : index
    %c0_31 = arith.constant 0 : index
    %118 = vector.load %arg6[%c0_30, %c0_31] : memref<128x128xbf16, #tpu.memory_space<vmem>>, vector<128x128xbf16>
    %cst_32 = arith.constant dense<0.000000e+00> : vector<16x128xf32>
    %119 = tpu.matmul %117, %118, %cst_32 {dimension_numbers = #tpu.dot_dimension_numbers<[1], [0], [0], [1], [0, 0, 1, 1], [], []>} : vector<16x128xbf16>, vector<128x128xbf16>, vector<16x128xf32> -> vector<16x128xf32>
    %120 = arith.addf %9, %119 : vector<16x128xf32>
    %121 = vector.extract_strided_slice %10 {offsets = [1, 0], sizes = [1, 128], strides = [1, 1]} : vector<3x128xf32> to vector<1x128xf32>
    %122 = arith.mulf %120, %120 : vector<16x128xf32>
    %cst_33 = arith.constant dense<0.000000e+00> : vector<16xf32>
    %123 = vector.multi_reduction <add>, %122, %cst_33 [1] : vector<16x128xf32> to vector<16xf32>
    %124 = vector.shape_cast %123 : vector<16xf32> to vector<16x1xf32>
    %cst_34 = arith.constant 1.280000e+02 : f32
    %125 = vector.broadcast %cst_34 : f32 to vector<16x1xf32>
    %126 = arith.divf %124, %125 : vector<16x1xf32>
    %cst_35 = arith.constant 9.99999997E-7 : f32
    %127 = vector.broadcast %cst_35 : f32 to vector<16x1xf32>
    %128 = arith.addf %126, %127 : vector<16x1xf32>
    %129 = math.rsqrt %128 : vector<16x1xf32>
    %130 = vector.broadcast %129 : vector<16x1xf32> to vector<16x128xf32>
    %131 = arith.mulf %120, %130 : vector<16x128xf32>
    %132 = vector.broadcast %121 : vector<1x128xf32> to vector<16x128xf32>
    %133 = arith.mulf %131, %132 : vector<16x128xf32>
    %c0_36 = arith.constant 0 : index
    %c0_37 = arith.constant 0 : index
    %134 = vector.load %arg7[%c0_36, %c0_37] : memref<128x256xbf16, #tpu.memory_space<vmem>>, vector<128x256xbf16>
    %135 = arith.truncf %133 : vector<16x128xf32> to vector<16x128xbf16>
    %cst_38 = arith.constant dense<0.000000e+00> : vector<16x256xf32>
    %136 = tpu.matmul %135, %134, %cst_38 {dimension_numbers = #tpu.dot_dimension_numbers<[1], [0], [0], [1], [0, 0, 1, 1], [], []>} : vector<16x128xbf16>, vector<128x256xbf16>, vector<16x256xf32> -> vector<16x256xf32>
    %cst_39 = arith.constant 0.000000e+00 : f32
    %137 = vector.broadcast %cst_39 : f32 to vector<16x256xf32>
    %138 = arith.maximumf %136, %137 : vector<16x256xf32>
    %c0_40 = arith.constant 0 : index
    %c0_41 = arith.constant 0 : index
    %139 = vector.load %arg8[%c0_40, %c0_41] : memref<256x128xbf16, #tpu.memory_space<vmem>>, vector<256x128xbf16>
    %140 = arith.truncf %138 : vector<16x256xf32> to vector<16x256xbf16>
    %cst_42 = arith.constant dense<0.000000e+00> : vector<16x128xf32>
    %141 = tpu.matmul %140, %139, %cst_42 {dimension_numbers = #tpu.dot_dimension_numbers<[1], [0], [0], [1], [0, 0, 1, 1], [], []>} : vector<16x256xbf16>, vector<256x128xbf16>, vector<16x128xf32> -> vector<16x128xf32>
    %142 = arith.addf %120, %141 : vector<16x128xf32>
    %143 = vector.extract_strided_slice %10 {offsets = [2, 0], sizes = [1, 128], strides = [1, 1]} : vector<3x128xf32> to vector<1x128xf32>
    %144 = arith.mulf %142, %142 : vector<16x128xf32>
    %cst_43 = arith.constant dense<0.000000e+00> : vector<16xf32>
    %145 = vector.multi_reduction <add>, %144, %cst_43 [1] : vector<16x128xf32> to vector<16xf32>
    %146 = vector.shape_cast %145 : vector<16xf32> to vector<16x1xf32>
    %cst_44 = arith.constant 1.280000e+02 : f32
    %147 = vector.broadcast %cst_44 : f32 to vector<16x1xf32>
    %148 = arith.divf %146, %147 : vector<16x1xf32>
    %cst_45 = arith.constant 9.99999997E-7 : f32
    %149 = vector.broadcast %cst_45 : f32 to vector<16x1xf32>
    %150 = arith.addf %148, %149 : vector<16x1xf32>
    %151 = math.rsqrt %150 : vector<16x1xf32>
    %152 = vector.broadcast %151 : vector<16x1xf32> to vector<16x128xf32>
    %153 = arith.mulf %142, %152 : vector<16x128xf32>
    %154 = vector.broadcast %143 : vector<1x128xf32> to vector<16x128xf32>
    %155 = arith.mulf %153, %154 : vector<16x128xf32>
    %c0_46 = arith.constant 0 : index
    %c0_47 = arith.constant 0 : index
    %156 = vector.load %arg11[%c0_46, %c0_47] : memref<16x128xf32, #tpu.memory_space<vmem>>, vector<16x128xf32>
    tpu.vector_store %arg11[%c0_46, %c0_47], %155 {strides = array<i32>} : memref<16x128xf32, #tpu.memory_space<vmem>>, vector<16x128xf32>,
    %c0_48 = arith.constant 0 : index
    %c0_49 = arith.constant 0 : index
    %157 = vector.load %arg9[%c0_48, %c0_49] : memref<128x128xbf16, #tpu.memory_space<vmem>>, vector<128x128xbf16>
    %158 = arith.truncf %155 : vector<16x128xf32> to vector<16x128xbf16>
    %cst_50 = arith.constant dense<0.000000e+00> : vector<16x128xf32>
    %159 = tpu.matmul %158, %157, %cst_50 {dimension_numbers = #tpu.dot_dimension_numbers<[1], [0], [0], [1], [0, 0, 1, 1], [], []>} : vector<16x128xbf16>, vector<128x128xbf16>, vector<16x128xf32> -> vector<16x128xf32>
    %c0_51 = arith.constant 0 : index
    %c0_52 = arith.constant 0 : index
    %160 = vector.load %arg12[%c0_51, %c0_52] : memref<16x128xf32, #tpu.memory_space<vmem>>, vector<16x128xf32>
    tpu.vector_store %arg12[%c0_51, %c0_52], %159 {strides = array<i32>} : memref<16x128xf32, #tpu.memory_space<vmem>>, vector<16x128xf32>,
    %c0_53 = arith.constant 0 : index
    %c0_54 = arith.constant 0 : index
    %161 = vector.load %arg10[%c0_53, %c0_54] : memref<128x128xbf16, #tpu.memory_space<vmem>>, vector<128x128xbf16>
    %162 = arith.truncf %155 : vector<16x128xf32> to vector<16x128xbf16>
    %cst_55 = arith.constant dense<0.000000e+00> : vector<16x128xf32>
    %163 = tpu.matmul %162, %161, %cst_55 {dimension_numbers = #tpu.dot_dimension_numbers<[1], [0], [0], [1], [0, 0, 1, 1], [], []>} : vector<16x128xbf16>, vector<128x128xbf16>, vector<16x128xf32> -> vector<16x128xf32>
    %c0_56 = arith.constant 0 : index
    %c0_57 = arith.constant 0 : index
    %164 = vector.load %arg13[%c0_56, %c0_57] : memref<16x128xf32, #tpu.memory_space<vmem>>, vector<16x128xf32>
    tpu.vector_store %arg13[%c0_56, %c0_57], %163 {strides = array<i32>} : memref<16x128xf32, #tpu.memory_space<vmem>>, vector<16x128xf32>,
    return
  }
  func.func @transform_0(%arg0: i32, %arg1: memref<1xi32, #tpu.memory_space<smem>>) -> (i32, i32) {
    %c0_i32 = arith.constant 0 : i32
    %c0_i32_0 = arith.constant 0 : i32
    %c0_i32_1 = arith.constant 0 : i32
    return %c0_i32, %c0_i32_0 : i32, i32
  }
  func.func @transform_1(%arg0: i32, %arg1: memref<1xi32, #tpu.memory_space<smem>>) -> (i32, i32) {
    %c0_i32 = arith.constant 0 : i32
    %c0_i32_0 = arith.constant 0 : i32
    %c0_i32_1 = arith.constant 0 : i32
    return %c0_i32, %c0_i32_0 : i32, i32
  }
  func.func @transform_2(%arg0: i32, %arg1: memref<1xi32, #tpu.memory_space<smem>>) -> (i32, i32) {
    %c0_i32 = arith.constant 0 : i32
    %c0_i32_0 = arith.constant 0 : i32
    %c0_i32_1 = arith.constant 0 : i32
    return %c0_i32, %c0_i32_0 : i32, i32
  }
  func.func @transform_3(%arg0: i32, %arg1: memref<1xi32, #tpu.memory_space<smem>>) -> (i32, i32) {
    %c0_i32 = arith.constant 0 : i32
    %c0_i32_0 = arith.constant 0 : i32
    %c0_i32_1 = arith.constant 0 : i32
    return %c0_i32, %c0_i32_0 : i32, i32
  }
  func.func @transform_4(%arg0: i32, %arg1: memref<1xi32, #tpu.memory_space<smem>>) -> (i32, i32) {
    %c0_i32 = arith.constant 0 : i32
    %c0_i32_0 = arith.constant 0 : i32
    %c0_i32_1 = arith.constant 0 : i32
    return %c0_i32, %c0_i32_0 : i32, i32
  }
  func.func @transform_5(%arg0: i32, %arg1: memref<1xi32, #tpu.memory_space<smem>>) -> (i32, i32) {
    %c0_i32 = arith.constant 0 : i32
    %c0_i32_0 = arith.constant 0 : i32
    %c0_i32_1 = arith.constant 0 : i32
    return %c0_i32, %c0_i32_0 : i32, i32
  }
  func.func @transform_6(%arg0: i32, %arg1: memref<1xi32, #tpu.memory_space<smem>>) -> (i32, i32) {
    %c0_i32 = arith.constant 0 : i32
    %c0_i32_0 = arith.constant 0 : i32
    %c0_i32_1 = arith.constant 0 : i32
    return %c0_i32, %c0_i32_0 : i32, i32
  }
  func.func @transform_7(%arg0: i32, %arg1: memref<1xi32, #tpu.memory_space<smem>>) -> (i32, i32) {
    %c0_i32 = arith.constant 0 : i32
    %c0_i32_0 = arith.constant 0 : i32
    %c0_i32_1 = arith.constant 0 : i32
    return %c0_i32, %c0_i32_0 : i32, i32
  }
  func.func @transform_8(%arg0: i32, %arg1: memref<1xi32, #tpu.memory_space<smem>>) -> (i32, i32) {
    %c0_i32 = arith.constant 0 : i32
    %c0_i32_0 = arith.constant 0 : i32
    %c0_i32_1 = arith.constant 0 : i32
    return %c0_i32, %c0_i32_0 : i32, i32
  }
  func.func @transform_9(%arg0: i32, %arg1: memref<1xi32, #tpu.memory_space<smem>>) -> (i32, i32) {
    %c0_i32 = arith.constant 0 : i32
    %c0_i32_0 = arith.constant 0 : i32
    %c0_i32_1 = arith.constant 0 : i32
    return %c0_i32, %c0_i32_0 : i32, i32
  }
  func.func @transform_10(%arg0: i32, %arg1: memref<1xi32, #tpu.memory_space<smem>>) -> (i32, i32) {
    %c0_i32 = arith.constant 0 : i32
    %c0_i32_0 = arith.constant 0 : i32
    %c0_i32_1 = arith.constant 0 : i32
    return %c0_i32, %c0_i32_0 : i32, i32
  }
  func.func @transform_11(%arg0: i32, %arg1: memref<1xi32, #tpu.memory_space<smem>>) -> (i32, i32) {
    %c0_i32 = arith.constant 0 : i32
    %c0_i32_0 = arith.constant 0 : i32
    %c0_i32_1 = arith.constant 0 : i32
    return %c0_i32, %c0_i32_0 : i32, i32
  }
}

</mosaic_0001>

<bundles_post_ra>
// kernel: encoder_prep.1
= control target key start
LH: loop header
LB: loop body
LE: loop exit
PB: predicated region body
PF: predicated region fallthrough
CT: control target
= control target key end

     0   :  { %19 = vsyncpa [#allocation5], 0  ;;  %s3075_s0 = inlined_call_operand.<no memory space> [shape: s32[1], index: 0, kind: input, shape index: {}]   ;;  %s3076_s1 = inlined_call_operand.vmem [shape: s32[16,1], index: 1, kind: input, shape index: {}]   ;;  %s3077_s2 = inlined_call_operand.hbm [shape: bf16[256,128], index: 2, kind: input, shape index: {}]   ;;  %s3078_s3 = inlined_call_operand.vmem [shape: f32[3,128], index: 3, kind: input, shape index: {}]   ;;  %s3079_s4 = inlined_call_operand.hbm [shape: bf16[128,384], index: 4, kind: input, shape index: {}]   ;;  %s3080_s5 = inlined_call_operand.hbm [shape: bf16[128,128], index: 5, kind: input, shape index: {}]   ;;  %s3081_s6 = inlined_call_operand.hbm [shape: bf16[128,256], index: 6, kind: input, shape index: {}]   ;;  %s3082_s7 = inlined_call_operand.hbm [shape: bf16[256,128], index: 7, kind: input, shape index: {}]   ;;  %s3083_s8 = inlined_call_operand.hbm [shape: bf16[128,128], index: 8, kind: input, shape index: {}]   ;;  %s3084_s9 = inlined_call_operand.hbm [shape: bf16[128,128], index: 9, kind: input, shape index: {}]   ;;  %s3085_s10 = inlined_call_operand.hbm [shape: f32[16,128], index: 10, kind: output, shape index: {0}]   ;;  %s3086_s11 = inlined_call_operand.hbm [shape: f32[16,128], index: 11, kind: output, shape index: {1}]   ;;  %s3087_s12 = inlined_call_operand.hbm [shape: f32[16,128], index: 12, kind: output, shape index: {2}]  }
   0x1   :  { %20 = vsyncpa [#allocation8], 0 }
   0x2   :  { %21 = vsyncpa [#allocation11], 0 }
   0x3   :  { %22 = vsyncpa [#allocation14], 0 }
   0x4   :  { %23 = vsyncpa [#allocation6], 0 }
   0x5   :  { %24 = vsyncpa [#allocation18], 0  ;;  %s2613_s21 = smov [#allocation7]   ;;  %s2381_s25 = scalar_lea.hbm %s3079_s4, 3072 }
   0x6   :  { %s46_s22 = sshll.u32 %s2613_s21, 4  ;;  %p2382_p0 = scmp.ne.s32.totalorder %s3079_s4, %s2381_s25  ;;  %s47_s22 = int_to_ptr.vmem [resolvable:$true] %s46_s22 }
   0x7   :  { %p2385_p1 = scmp.lt.u32.totalorder %s2381_s25, %s3079_s4 }
   0x9   :  { %p2387_p2 = pnand %p2385_p1, %p2382_p0 }
   0xb   :  { %2390 = shalt.err (!%p2387_p2)
}
   0xc   :  { %s2391_s30 = scalar_lea.vmem %s47_s22, 3072  ;;  %p2396_p4 = scmp.lt.s32.totalorder %s47_s22, %s47_s22 }
   0xd   :  { %p2392_p3 = scmp.ne.s32.totalorder %s47_s22, %s2391_s30  ;;  %p2397_p5 = scmp.lt.s32.totalorder %s2391_s30, %s2391_s30 }
   0xf   :  { %p2398_p6 = por %p2397_p5, %p2396_p4 }
  0x11   :  { %p2399_p7 = pnand %p2398_p6, %p2392_p3 }
  0x13   :  { %2402 = shalt.err (!%p2399_p7)
}
  0x14   :  { %s2614_s13 = smov 192   ;;  %s2615_s14 = smov 12  }
  0x15   :  { %52 = dma.hbm_to_vmem [thread:$0]  %s3079_s4, 3072, %s47_s22, [#allocation8], %s2614_s13, %s2614_s13, %s2615_s14  }
  0x16   :  { %s2616_s17 = smov [#allocation10]   ;;  %s2403_s21 = scalar_lea.hbm %s3081_s6, 2048 }
  0x17   :  { %s70_s18 = sshll.u32 %s2616_s17, 4  ;;  %p2404_p8 = scmp.ne.s32.totalorder %s3081_s6, %s2403_s21  ;;  %s71_s18 = int_to_ptr.vmem [resolvable:$true] %s70_s18 }
  0x18   :  { %p2407_p9 = scmp.lt.u32.totalorder %s2403_s21, %s3081_s6 }
  0x1a   :  { %p2409_p10 = pnand %p2407_p9, %p2404_p8 }
  0x1c   :  { %2412 = shalt.err (!%p2409_p10)
}
  0x1d   :  { %s2413_s27 = scalar_lea.vmem %s71_s18, 2048  ;;  %p2418_p12 = scmp.lt.s32.totalorder %s71_s18, %s71_s18 }
  0x1e   :  { %p2414_p11 = scmp.ne.s32.totalorder %s71_s18, %s2413_s27  ;;  %p2419_p13 = scmp.lt.s32.totalorder %s2413_s27, %s2413_s27 }
  0x20   :  { %p2420_p0 = por %p2419_p13, %p2418_p12 }
  0x22   :  { %p2421_p1 = pnand %p2420_p0, %p2414_p11 }
  0x24   :  { %2424 = shalt.err (!%p2421_p1)
}
  0x25   :  { %s2617_s4 = smov 128   ;;  %s2618_s22 = smov 8  }
  0x26   :  { %76 = dma.hbm_to_vmem [thread:$0]  %s3081_s6, 2048, %s71_s18, [#allocation11], %s2617_s4, %s2617_s4, %s2618_s22  }
  0x27   :  { %s2619_s30 = smov [#allocation13]   ;;  %s2620_s14 = smov [#allocation4]  }
  0x28   :  { %s94_s13 = sshll.u32 %s2619_s30, 4  ;;  %s32_s15 = sshll.u32 %s2620_s14, 4  ;;  %s95_s13 = int_to_ptr.vmem [resolvable:$true] %s94_s13  ;;  %s2728_s15 = int_to_ptr.vmem [resolvable:$true] %s32_s15 }
  0x29   :  { %s2425_s19 = scalar_lea.hbm %s3083_s8, 1024 }
  0x2a   :  { %p2426_p2 = scmp.ne.s32.totalorder %s3083_s8, %s2425_s19  ;;  %p2429_p3 = scmp.lt.u32.totalorder %s2425_s19, %s3083_s8 }
  0x2c   :  { %p2431_p4 = pnand %p2429_p3, %p2426_p2 }
  0x2e   :  { %2434 = shalt.err (!%p2431_p4)
}
  0x2f   :  { %s2435_s6 = scalar_lea.vmem %s95_s13, 1024  ;;  %p2440_p6 = scmp.lt.s32.totalorder %s95_s13, %s95_s13 }
  0x30   :  { %p2436_p5 = scmp.ne.s32.totalorder %s95_s13, %s2435_s6  ;;  %p2441_p7 = scmp.lt.s32.totalorder %s2435_s6, %s2435_s6 }
  0x32   :  { %p2442_p8 = por %p2441_p7, %p2440_p6 }
  0x34   :  { %p2443_p9 = pnand %p2442_p8, %p2436_p5 }
  0x36   :  { %2446 = shalt.err (!%p2443_p9)
}
  0x37   :  { %s2621_s18 = smov 64   ;;  %s2622_s25 = smov 4  }
  0x38   :  { %100 = dma.hbm_to_vmem [thread:$0]  %s3083_s8, 1024, %s95_s13, [#allocation14], %s2621_s18, %s2621_s18, %s2622_s25  }
  0x39   :  { %s2447_s30 = scalar_lea.hbm %s3077_s2, 2048 }
  0x3a   :  { %p2448_p10 = scmp.ne.s32.totalorder %s3077_s2, %s2447_s30  ;;  %p2451_p11 = scmp.lt.u32.totalorder %s2447_s30, %s3077_s2 }
  0x3c   :  { %p2453_p12 = pnand %p2451_p11, %p2448_p10 }
  0x3e   :  { %2456 = shalt.err (!%p2453_p12)
}
  0x3f   :  { %s2457_s20 = scalar_lea.vmem %s2728_s15, 2048  ;;  %p2462_p0 = scmp.lt.s32.totalorder %s2728_s15, %s2728_s15 }
  0x40   :  { %p2458_p13 = scmp.ne.s32.totalorder %s2728_s15, %s2457_s20  ;;  %p2463_p1 = scmp.lt.s32.totalorder %s2457_s20, %s2457_s20 }
  0x42   :  { %p2464_p2 = por %p2463_p1, %p2462_p0 }
  0x44   :  { %p2465_p3 = pnand %p2464_p2, %p2458_p13 }
  0x46   :  { %2468 = shalt.err (!%p2465_p3)
}
  0x47   :  { %38 = dma.hbm_to_vmem [thread:$0]  %s3077_s2, 2048, %s2728_s15, [#allocation5], %s2621_s18, %s2621_s18, %s2622_s25  }
  0x48   :  { %s2623_s21 = smov [#allocation9]   ;;  %s2624_s24 = smov [#allocation12]  }
  0x49   :  { %s58_s23 = sshll.u32 %s2623_s21, 4  ;;  %s82_s6 = sshll.u32 %s2624_s24, 4  ;;  %s59_s23 = int_to_ptr.vmem [resolvable:$true] %s58_s23  ;;  %s2765_s6 = int_to_ptr.vmem [resolvable:$true] %s82_s6 }
  0x4a   :  { %s2469_s28 = scalar_lea.hbm %s3080_s5, 1024 }
  0x4b   :  { %p2470_p4 = scmp.ne.s32.totalorder %s3080_s5, %s2469_s28  ;;  %p2473_p5 = scmp.lt.u32.totalorder %s2469_s28, %s3080_s5 }
  0x4d   :  { %p2475_p6 = pnand %p2473_p5, %p2470_p4 }
  0x4f   :  { %2478 = shalt.err (!%p2475_p6)
}
  0x50   :  { %s2479_s2 = scalar_lea.vmem %s59_s23, 1024  ;;  %p2484_p8 = scmp.lt.s32.totalorder %s59_s23, %s59_s23 }
  0x51   :  { %p2480_p7 = scmp.ne.s32.totalorder %s59_s23, %s2479_s2  ;;  %p2485_p9 = scmp.lt.s32.totalorder %s2479_s2, %s2479_s2 }
  0x53   :  { %p2486_p10 = por %p2485_p9, %p2484_p8 }
  0x55   :  { %p2487_p11 = pnand %p2486_p10, %p2480_p7 }
  0x57   :  { %2490 = shalt.err (!%p2487_p11)
}
  0x58   :  { %64 = dma.hbm_to_vmem [thread:$0]  %s3080_s5, 1024, %s59_s23, [#allocation8], %s2621_s18, %s2621_s18, %s2622_s25  }
  0x59   :  { %s2491_s8 = scalar_lea.hbm %s3082_s7, 2048 }
  0x5a   :  { %p2492_p12 = scmp.ne.s32.totalorder %s3082_s7, %s2491_s8  ;;  %p2495_p13 = scmp.lt.u32.totalorder %s2491_s8, %s3082_s7 }
  0x5c   :  { %p2497_p0 = pnand %p2495_p13, %p2492_p12 }
  0x5e   :  { %2500 = shalt.err (!%p2497_p0)
}
  0x5f   :  { %s2501_s27 = scalar_lea.vmem %s2765_s6, 2048  ;;  %p2506_p2 = scmp.lt.s32.totalorder %s2765_s6, %s2765_s6 }
  0x60   :  { %p2502_p1 = scmp.ne.s32.totalorder %s2765_s6, %s2501_s27  ;;  %p2507_p3 = scmp.lt.s32.totalorder %s2501_s27, %s2501_s27 }
  0x62   :  { %p2508_p4 = por %p2507_p3, %p2506_p2 }
  0x64   :  { %p2509_p5 = pnand %p2508_p4, %p2502_p1 }
  0x66   :  { %2512 = shalt.err (!%p2509_p5)
}
  0x67   :  { %88 = dma.hbm_to_vmem [thread:$0]  %s3082_s7, 2048, %s2765_s6, [#allocation11], %s2621_s18, %s2621_s18, %s2622_s25  }
  0x68   :  { %s2625_s28 = smov [#allocation15]   ;;  %s2513_s16 = scalar_lea.hbm %s3084_s9, 1024 }
  0x69   :  { %s106_s29 = sshll.u32 %s2625_s28, 4  ;;  %p2514_p6 = scmp.ne.s32.totalorder %s3084_s9, %s2513_s16  ;;  %s107_s29 = int_to_ptr.vmem [resolvable:$true] %s106_s29 }
  0x6a   :  { %p2517_p7 = scmp.lt.u32.totalorder %s2513_s16, %s3084_s9 }
  0x6c   :  { %p2519_p8 = pnand %p2517_p7, %p2514_p6 }
  0x6e   :  { %2522 = shalt.err (!%p2519_p8)
}
  0x6f   :  { %s2523_s20 = scalar_lea.vmem %s107_s29, 1024  ;;  %p2528_p10 = scmp.lt.s32.totalorder %s107_s29, %s107_s29 }
  0x70   :  { %p2524_p9 = scmp.ne.s32.totalorder %s107_s29, %s2523_s20  ;;  %p2529_p11 = scmp.lt.s32.totalorder %s2523_s20, %s2523_s20 }
  0x72   :  { %p2530_p12 = por %p2529_p11, %p2528_p10 }
  0x74   :  { %p2531_p13 = pnand %p2530_p12, %p2524_p9 }
  0x76   :  { %2534 = shalt.err (!%p2531_p13)
}
  0x77   :  { %112 = dma.hbm_to_vmem [thread:$0]  %s3084_s9, 1024, %s107_s29, [#allocation14], %s2621_s18, %s2621_s18, %s2622_s25  }
  0x78   :  { %2601 = dma.done.wait [#allocation5], 2048  }
  0x79   :  { %2602 = vsyncadd [#allocation5], 4294965248 }
  0x7a   :  { %2603 = dma.done.wait [#allocation8], 4096  }
  0x7b   :  { %2604 = vsyncadd [#allocation8], 4294963200 }
  0x7c   :  { %2605 = dma.done.wait [#allocation11], 4096  }
  0x7d   :  { %2606 = vsyncadd [#allocation11], 4294963200 }
  0x7e   :  { %2607 = dma.done.wait [#allocation14], 2048  }
  0x7f   :  { %2608 = vsyncadd [#allocation14], 4294965248  ;;  %v2626_v0 = vmov 0   ;;  %v136_v1 = vld [vmem:[%s3076_s1] sm:$0xff]  ;;  %v137_v2 = vld [vmem:[%s3076_s1 + $0x8] sm:$0xff]  ;;  %v138_v19 = vlaneseq  ;;  %v2628_v27 = vmov 0.0  }
  0x80   :  { %2209 = vset.pattern.permute.xlu0 %v2626_v0  ;;  %548 = vmatprep.mubr.bf16.mxu1 %v2626_v0  ;;  %v2225_v3 = vld [vmem:[#allocation4 + $0x40] sm:$0xff]   ;;  %v2227_v5 = vld [vmem:[#allocation4 + $0x48] sm:$0xff]   ;;  %v2229_v7 = vld [vmem:[#allocation4 + $0x50] sm:$0xff]   ;;  %v2627_v24 = vmov 1.0|1.0   ;;  %vm2629_vm6 = vmmov 0  }
  0x81   :  { %142 = vperm.xlu0 %2209, %v136_v1   ;;  %v2226_v4 = vld [vmem:[#allocation4] sm:$0xff]   ;;  %1962 = vmatprep.subr.bf16.mxu0 %v2225_v3  ;;  %v2228_v6 = vld [vmem:[#allocation4 + $0x8] sm:$0xff]   ;;  %v2230_v8 = vld [vmem:[#allocation4 + $0x10] sm:$0xff]   ;;  %v2826_v20 = vand.u32 127, %v138_v19  ;;  %v2852_v1 = vshrl.u32 %v138_v19, 7  ;;  %vm602_vm7 = vcmask 261120  }
  0x82   :  { %1963 = vmatpush3.bf16.msra.mxu0 %v2226_v4  ;;  %v2231_v9 = vld [vmem:[#allocation4 + $0x58] sm:$0xff]   ;;  %v2233_v11 = vld [vmem:[#allocation4 + $0x60] sm:$0xff]   ;;  %v2235_v13 = vld [vmem:[#allocation4 + $0x68] sm:$0xff]   ;;  %vm650_vm9 = vcmask 130048   ;;  %s2632_s26 = smov 32   ;;  %vm1111_vm10 = vcmask 523264  }
  0x83   :  { %1964 = vmatprep.subr.bf16.mxu0 %v2227_v5  ;;  %v2232_v10 = vld [vmem:[#allocation4 + $0x18] sm:$0xff]   ;;  %v2234_v12 = vld [vmem:[#allocation4 + $0x20] sm:$0xff]   ;;  %v2236_v14 = vld [vmem:[#allocation4 + $0x28] sm:$0xff]   ;;  %v140_v22 = vadd.s32 128, %v2826_v20  ;;  %vm1114_vm11 = vcmask 785408  }
  0x84   :  { %v2237_v15 = vld [vmem:[#allocation4 + $0x70] sm:$0xff]   ;;  %v2239_v17 = vld [vmem:[#allocation4 + $0x78] sm:$0xff]   ;;  %v2243_v26 = vld [vmem:[#allocation7] ss:$12 sps:$4 sm:$0xff]  }
  0x85   :  { %145 = vperm.xlu0 %2209, %v137_v2   ;;  %v2238_v16 = vld [vmem:[#allocation4 + $0x30] sm:$0xff]   ;;  %v2240_v18 = vld [vmem:[#allocation4 + $0x38] sm:$0xff]   ;;  %v2248_v31 = vld [vmem:[#allocation7 + $0x20] ss:$12 sps:$4 sm:$0xff]   ;;  %v351_v2 = vsub.s32 0, %v2852_v1 }
  0x86   :  { %1965 = vmatpush3.bf16.msra.mxu0 %v2228_v6  ;;  %v2241_v25 = vld [vmem:[#allocation7 + $0x4] ss:$12 sps:$4 sm:$0xff]   ;;  %v2244_v28 = vld [vmem:[#allocation7 + $0x8] ss:$12 sps:$4 sm:$0xff]   ;;  %v2253_v43 = vld [vmem:[#allocation7 + $0x4c] ss:$12 sps:$4 sm:$0xff]  }
  0x87   :  { %1966 = vmatprep.subr.bf16.mxu0 %v2229_v7  ;;  %v2245_v29 = vld [vmem:[#allocation7 + $0x1c] ss:$12 sps:$4 sm:$0xff]   ;;  %516 = vmatprep.subr.bf16.mxu1 %v2241_v25  ;;  %v2247_v30 = vld [vmem:[#allocation7 + $0x18] ss:$12 sps:$4 sm:$0xff]   ;;  %v2249_v40 = vld [vmem:[#allocation7 + $0x34] ss:$12 sps:$4 sm:$0xff]   ;;  %v331_v25 = vstv %s3075_s0 }
  0x88   :  { %517 = vmatpush1.bf16.msra.mxu1 %v2243_v26  ;;  %v2251_v41 = vld [vmem:[#allocation7 + $0x30] ss:$12 sps:$4 sm:$0xff]   ;;  %v2252_v42 = vld [vmem:[#allocation7 + $0x38] ss:$12 sps:$4 sm:$0xff]   ;;  %v2255_v44 = vld [vmem:[#allocation7 + $0x48] ss:$12 sps:$4 sm:$0xff]   ;;  %vm332_vm8 = vcmp.lt.s32.totalorder %v2826_v20, %v331_v25 }
  0x89   :  { %518 = vmatprep.subr.bf16.mxu1 %v2245_v29  ;;  %v2256_v45 = vld [vmem:[#allocation7 + $0x50] ss:$12 sps:$4 sm:$0xff]   ;;  %v2259_v47 = vld [vmem:[#allocation7 + $0x60] ss:$12 sps:$4 sm:$0xff]   ;;  %v2260_v48 = vld [vmem:[#allocation7 + $0x68] ss:$12 sps:$4 sm:$0xff]  }
  0x8a   :  { %1967 = vmatpush3.bf16.msra.mxu0 %v2230_v8  ;;  %v2257_v46 = vld [vmem:[#allocation7 + $0x64] ss:$12 sps:$4 sm:$0xff]   ;;  %v2261_v49 = vld [vmem:[#allocation7 + $0x7c] ss:$12 sps:$4 sm:$0xff]   ;;  %v2264_v51 = vld [vmem:[#allocation7 + $0x80] ss:$12 sps:$4 sm:$0xff]  }
  0x8b   :  { %1968 = vmatprep.subr.bf16.mxu0 %v2231_v9  ;;  %v2263_v50 = vld [vmem:[#allocation7 + $0x78] ss:$12 sps:$4 sm:$0xff]   ;;  %v2265_v52 = vld [vmem:[#allocation7 + $0x94] ss:$12 sps:$4 sm:$0xff]   ;;  %v2267_v53 = vld [vmem:[#allocation7 + $0x90] ss:$12 sps:$4 sm:$0xff]  }
  0x8c   :  { %519 = vmatpush1.bf16.msra.mxu1 %v2247_v30  ;;  %v2268_v54 = vld [vmem:[#allocation7 + $0x98] ss:$12 sps:$4 sm:$0xff]   ;;  %v2271_v56 = vld [vmem:[#allocation7 + $0xa8] ss:$12 sps:$4 sm:$0xff]   ;;  %v2272_v57 = vld [vmem:[#allocation7 + $0xb0] ss:$12 sps:$4 sm:$0xff]  }
  0x8d   :  { %520 = vmatprep.subr.bf16.mxu1 %v2249_v40  ;;  %v2269_v55 = vld [vmem:[#allocation7 + $0xac] ss:$12 sps:$4 sm:$0xff]   ;;  %v2858_v4 = vld [vmem:[%s3078_s3] sm:$0x7]  ;;  %v2630_v26 = vmov -1e+09  }
  0x8e   :  { %1969 = vmatpush3.bf16.msra.mxu0 %v2232_v10  ;;  %v352_v6 = vrot.slane %v2858_v4, %v351_v2  ;;  %s2631_s0 = smov 96  }
  0x8f   :  { %1970 = vmatprep.subr.bf16.mxu0 %v2233_v11 }
  0x90   :  { %521 = vmatpush1.bf16.msra.mxu1 %v2251_v41 }
  0x91   :  { %522 = vmatprep.subr.bf16.mxu1 %v2253_v43 }
  0x92   :  { %1971 = vmatpush3.bf16.msra.mxu0 %v2234_v12 }
  0x93   :  { %1972 = vmatprep.subr.bf16.mxu0 %v2235_v13 }
  0x94   :  { %523 = vmatpush1.bf16.msra.mxu1 %v2255_v44 }
  0x95   :  { %524 = vmatprep.subr.bf16.mxu1 %v2257_v46 }
  0x96   :  { %1973 = vmatpush3.bf16.msra.mxu0 %v2236_v14 }
  0x97   :  { %1974 = vmatprep.subr.bf16.mxu0 %v2237_v15 }
  0x98   :  { %525 = vmatpush1.bf16.msra.mxu1 %v2259_v47 }
  0x99   :  { %526 = vmatprep.subr.bf16.mxu1 %v2261_v49 }
  0x9a   :  { %1975 = vmatpush3.bf16.msra.mxu0 %v2238_v16 }
  0x9b   :  { %1976 = vmatprep.subr.bf16.mxu0 %v2239_v17 }
  0x9c   :  { %527 = vmatpush1.bf16.msra.mxu1 %v2263_v50 }
  0x9d   :  { %528 = vmatprep.subr.bf16.mxu1 %v2265_v52 }
  0x9e   :  { %1977 = vmatpush3.bf16.msra.mxu0 %v2240_v18 }
  0x9f   :  { %2058 = vmatprep.subr.bf16.mxu0 %v2628_v27 }
  0xa0   :  { %529 = vmatpush1.bf16.msra.mxu1 %v2267_v53 }
  0xa1   :  { %530 = vmatprep.subr.bf16.mxu1 %v2269_v55 }
  0xa4   :  { %531 = vmatpush1.bf16.msra.mxu1 %v2271_v56 }
  0xa5   :  { %2078 = vmatprep.subr.bf16.mxu1 %v2628_v27 }
 0x100   :  { %v143_v21 = vpop.permute.xlu0 %142 }
 0x101   :  { %vm147_vm0 = vcmp.eq.s32.totalorder %v143_v21, %v2826_v20  ;;  %vm148_vm4 = vcmp.eq.s32.totalorder %v143_v21, %v140_v22 }
 0x104   :  { %v146_v23 = vpop.permute.xlu0 %145 }
 0x105   :  { %vm149_vm1 = vcmp.eq.s32.totalorder %v146_v23, %v2826_v20  ;;  %vm150_vm2 = vcmp.eq.s32.totalorder %v146_v23, %v140_v22 }
 0x106   :  { %vm1872_vm3 = vmpackc.low %vm149_vm1, %vm147_vm0 }
 0x107   :  { %vm1870_vm5 = vmpackc.low %vm150_vm2, %vm148_vm4 }
 0x108   :  { %1871 = vmatprep.mubr.msk.bf16.mxu0 %vm1870_vm5, %v2627_v24 }
 0x109   :  { %1873 = vmatmul.mubr.msk.bf16.vlgmr.msra.gmra.mrb[0].mxu0 %vm1872_vm3, %v2627_v24 }
 0x10a   :  { %2059 = vmatpush3.bf16.msra.mxu0 %v2244_v28  ;;  %2074 = vmatprep.mubr.msk.bf16.mxu0 %vm2629_vm6, %v2628_v27  ;;  %v2886_v28 = vsel %vm332_vm8, 0.0, %v2630_v26 }
 0x10b   :  { %2060 = vmatprep.subr.bf16.mxu0 %v2628_v27 }
 0x10e   :  { %2061 = vmatpush3.bf16.msra.mxu0 %v2248_v31 }
 0x10f   :  { %2062 = vmatprep.subr.bf16.mxu0 %v2628_v27 }
 0x112   :  { %2063 = vmatpush3.bf16.msra.mxu0 %v2252_v42 }
 0x113   :  { %2064 = vmatprep.subr.bf16.mxu0 %v2628_v27 }
 0x116   :  { %2065 = vmatpush3.bf16.msra.mxu0 %v2256_v45 }
 0x117   :  { %2066 = vmatprep.subr.bf16.mxu0 %v2628_v27 }
 0x11a   :  { %2067 = vmatpush3.bf16.msra.mxu0 %v2260_v48 }
 0x11b   :  { %2068 = vmatprep.subr.bf16.mxu0 %v2628_v27 }
 0x11e   :  { %2069 = vmatpush3.bf16.msra.mxu0 %v2264_v51 }
 0x11f   :  { %2070 = vmatprep.subr.bf16.mxu0 %v2628_v27 }
 0x122   :  { %2071 = vmatpush3.bf16.msra.mxu0 %v2268_v54 }
 0x123   :  { %2072 = vmatprep.subr.bf16.mxu0 %v2628_v27 }
 0x126   :  { %2073 = vmatpush3.bf16.msra.mxu0 %v2272_v57 }
 0x127   :  { %2126 = vmatprep.subr.bf16.mxu0 %v2628_v27 }
 0x1dc   :  { %v1978_v32 = vpop.f32.mrb[0].mxu0 }
 0x1dd   :  { %v1979_v33 = vpop.f32.mrb[1].mxu0 }
 0x1de   :  { %v2834_v34 = vadd.f32 %v1979_v33, %v1978_v32  ;;  %v1981_v35 = vpop.f32.mrb[2].mxu0 }
 0x1df   :  { %v1982_v36 = vpop.f32.mrb[3].mxu0 }
 0x1e0   :  { %v2836_v37 = vadd.f32 %v1982_v36, %v1981_v35  ;;  %v334_v38 = vmul.f32 %v2834_v34, %v2834_v34 }
 0x1e2   :  { %336 = vadd.xlane.f32.xlu1 %v334_v38  ;;  %v335_v39 = vmul.f32 %v2836_v37, %v2836_v37 }
 0x1e6   :  { %338 = vadd.xlane.f32.xlu1 %v335_v39 }
 0x26f   :  { %v337_v58 = vpop.xlane.xlu1 %336 }
 0x270   :  { %v341_v59 = vmul.f32 0.0078125, %v337_v58 }
 0x272   :  { %v343_v60 = vadd.f32 1e-06, %v341_v59 }
 0x273   :  { %v339_v61 = vpop.xlane.xlu1 %338 }
 0x274   :  { %2337 = vrsqrt.f32 %v343_v60  ;;  %v342_v62 = vmul.f32 0.0078125, %v339_v61 }
 0x276   :  { %v344_v63 = vadd.f32 1e-06, %v342_v62 }
 0x278   :  { %2339 = vrsqrt.f32 %v344_v63 }
 0x27e   :  { %v2338_v3 = vpop.eup %2337 }
 0x27f   :  { %v347_v5 = vmul.f32 %v2338_v3, %v2834_v34 }
 0x281   :  { %v353_v9 = vmul.f32 %v352_v6, %v347_v5 }
 0x282   :  { %v2340_v7 = vpop.eup %2339 }
 0x283   :  { %v348_v8 = vmul.f32 %v2340_v7, %v2836_v37 }
 0x285   :  { %v354_v10 = vmul.f32 %v352_v6, %v348_v8 }
 0x287   :  { %v387_v11 = vpack.c.bf16 %v354_v10, %v353_v9 }
 0x289   :  { %549 = vmatmul.mubr.bf16.vlgmr.msra.gmra.mrb[0].mxu1 %v387_v11  ;;  %2075 = vmatmul.mubr.bf16.vlgmr.msra.gmra.mrb[4].mxu0 %v387_v11 }
 0x28a   :  { %2080 = vmatprep.mubr.msk.bf16.mxu1 %vm2629_vm6, %v2628_v27  ;;  %2142 = vmatprep.mubr.msk.bf16.mxu0 %vm2629_vm6, %v2628_v27 }
 0x35c   :  { %v550_v12 = vpop.f32.mrb[0].mxu1  ;;  %v593_v13 = vpop.f32.mrb[4].mxu0 }
 0x35d   :  { %v552_v14 = vpop.f32.mrb[1].mxu1  ;;  %v2076_v15 = vpop.f32.mrb[5].mxu0 }
 0x35e   :  { %v554_v16 = vpop.f32.mrb[2].mxu1  ;;  %v596_v17 = vpop.f32.mrb[6].mxu0 }
 0x35f   :  { %v2867_v18 = vpack.c.bf16 %v554_v16, %v550_v12  ;;  %v2869_v19 = vpack.c.bf16 %v596_v17, %v593_v13  ;;  %v556_v21 = vpop.f32.mrb[3].mxu1  ;;  %v2077_v22 = vpop.f32.mrb[7].mxu0 }
 0x360   :  { %v2871_v23 = vpack.c.bf16 %v556_v21, %v552_v14 }
 0x362   :  { %v607_v24 = vsel %vm602_vm7, %v2871_v23, 0 }
 0x363   :  { %2079 = vmatpush3.bf16.xpose.msra.mxu1 %v607_v24 }
 0x364   :  { %2084 = vmatprep.subr.bf16.mxu1 %v2628_v27 }
 0x36a   :  { %2081 = vmatmul.mubr.msk.bf16.vlgmr.msra.gmra.mrb[4].mxu1 %vm602_vm7, %v2867_v18 }
 0x36b   :  { %2085 = vmatpush3.bf16.msra.mxu1 %v2869_v19  ;;  %2086 = vmatprep.mubr.msk.bf16.mxu1 %vm2629_vm6, %v2628_v27 }
 0x36c   :  { %2090 = vmatprep.subr.bf16.mxu1 %v2628_v27 }
 0x43d   :  { %v643_v29 = vpop.f32.mrb[4].mxu1 }
 0x43e   :  { %v644_v30 = vadd.f32 %v643_v29, %v2886_v28  ;;  %v2082_v31 = vpop.f32.mrb[5].mxu1 }
 0x43f   :  { %v646_v32 = vpop.f32.mrb[6].mxu1 }
 0x440   :  { %v647_v33 = vadd.f32 %v646_v32, %v2886_v28  ;;  %v2083_v35 = vpop.f32.mrb[7].mxu1  ;;  %v651_v36 = vsel %vm650_vm9, %v644_v30, -inf }
 0x441   :  { %652 = vmax.xlane.f32.xlu0 %v651_v36 }
 0x442   :  { %v654_v38 = vsel %vm650_vm9, %v647_v33, -inf }
 0x443   :  { %655 = vmax.xlane.f32.xlu1 %v654_v38 }
 0x4ce   :  { %v653_v39 = vpop.xlane.xlu0 %652 }
 0x4cf   :  { %v657_v20 = vsub.f32 %v644_v30, %v653_v39 }
 0x4d0   :  { %v656_v40 = vpop.xlane.xlu1 %655 }
 0x4d1   :  { %v659_v41 = vmul.f32 1.442695, %v657_v20  ;;  %v658_v42 = vsub.f32 %v647_v33, %v656_v40 }
 0x4d3   :  { %2341 = vpow2.f32 %v659_v41  ;;  %v661_v43 = vmul.f32 1.442695, %v658_v42 }
 0x4d5   :  { %2343 = vpow2.f32 %v661_v43 }
 0x4dd   :  { %v2342_v44 = vpop.eup %2341 }
 0x4de   :  { %v663_v45 = vsel %vm650_vm9, %v2342_v44, 0.0 }
 0x4df   :  { %v2344_v46 = vpop.eup %2343  ;;  %664 = vadd.xlane.f32.xlu1 %v663_v45 }
 0x4e0   :  { %v666_v47 = vsel %vm650_vm9, %v2344_v46, 0.0 }
 0x4e3   :  { %667 = vadd.xlane.f32.xlu1 %v666_v47 }
 0x4f4   :  { %723 = vrot.lane.b32.xlu1 %v2871_v23, %s2631_s0 }
 0x4f8   :  { %720 = vrot.lane.b32.xlu1 %v2867_v18, %s2631_s0 }
 0x56c   :  { %v665_v48 = vpop.xlane.xlu1 %664 }
 0x56d   :  { %2345 = vrcp.f32 %v665_v48 }
 0x570   :  { %v668_v49 = vpop.xlane.xlu1 %667 }
 0x571   :  { %2347 = vrcp.f32 %v668_v49 }
 0x574   :  { %v724_v54 = vpop.permute.xlu1 %723 }
 0x575   :  { %v729_v56 = vsel %vm602_vm7, %v724_v54, 0 }
 0x577   :  { %v2346_v50 = vpop.eup %2345 }
 0x578   :  { %v671_v52 = vmul.f32 %v2346_v50, %v2342_v44  ;;  %v721_v57 = vpop.permute.xlu1 %720 }
 0x57b   :  { %v2348_v51 = vpop.eup %2347 }
 0x57c   :  { %v672_v53 = vmul.f32 %v2348_v51, %v2344_v46 }
 0x57e   :  { %v673_v55 = vpack.c.bf16 %v672_v53, %v671_v52 }
 0x580   :  { %2087 = vmatmul.mubr.msk.bf16.vlgmr.msra.gmra.mrb[8].mxu1 %vm650_vm9, %v673_v55 }
 0x581   :  { %2091 = vmatpush3.bf16.xpose.msra.mxu1 %v729_v56  ;;  %2092 = vmatprep.mubr.msk.bf16.mxu1 %vm2629_vm6, %v2628_v27 }
 0x582   :  { %2096 = vmatprep.subr.bf16.mxu1 %v2628_v27 }
 0x588   :  { %2093 = vmatmul.mubr.msk.bf16.vlgmr.msra.gmra.mrb[12].mxu1 %vm602_vm7, %v721_v57 }
 0x589   :  { %2098 = vmatprep.mubr.msk.bf16.mxu1 %vm2629_vm6, %v2628_v27 }
 0x653   :  { %v2906_v58 = vpop.f32.mrb[8].mxu1 }
 0x654   :  { %v2088_v59 = vpop.f32.mrb[9].mxu1 }
 0x655   :  { %v2908_v60 = vpop.f32.mrb[10].mxu1 }
 0x656   :  { %v2089_v61 = vpop.f32.mrb[11].mxu1 }
 0x65b   :  { %v765_v62 = vpop.f32.mrb[12].mxu1 }
 0x65c   :  { %v766_v63 = vadd.f32 %v765_v62, %v2886_v28  ;;  %v2094_v2 = vpop.f32.mrb[13].mxu1 }
 0x65d   :  { %v768_v3 = vpop.f32.mrb[14].mxu1 }
 0x65e   :  { %v769_v5 = vadd.f32 %v768_v3, %v2886_v28  ;;  %v2095_v6 = vpop.f32.mrb[15].mxu1  ;;  %v772_v7 = vsel %vm650_vm9, %v766_v63, -inf }
 0x65f   :  { %773 = vmax.xlane.f32.xlu0 %v772_v7 }
 0x660   :  { %v775_v8 = vsel %vm650_vm9, %v769_v5, -inf }
 0x661   :  { %776 = vmax.xlane.f32.xlu1 %v775_v8 }
 0x675   :  { %796 = vrot.lane.b32.xlu0 %v2869_v19, %s2631_s0 }
 0x6ec   :  { %v774_v9 = vpop.xlane.xlu0 %773 }
 0x6ed   :  { %v778_v10 = vsub.f32 %v766_v63, %v774_v9 }
 0x6ee   :  { %v777_v11 = vpop.xlane.xlu1 %776 }
 0x6ef   :  { %v780_v12 = vmul.f32 1.442695, %v778_v10  ;;  %v779_v13 = vsub.f32 %v769_v5, %v777_v11 }
 0x6f0   :  { %v797_v14 = vpop.permute.xlu0 %796 }
 0x6f1   :  { %2349 = vpow2.f32 %v780_v12  ;;  %v782_v15 = vmul.f32 1.442695, %v779_v13  ;;  %2097 = vmatpush3.bf16.msra.mxu1 %v797_v14 }
 0x6f2   :  { %2102 = vmatprep.subr.bf16.mxu1 %v2628_v27 }
 0x6f3   :  { %2351 = vpow2.f32 %v782_v15 }
 0x6fb   :  { %v2350_v16 = vpop.eup %2349 }
 0x6fc   :  { %v784_v17 = vsel %vm650_vm9, %v2350_v16, 0.0 }
 0x6fd   :  { %v2352_v21 = vpop.eup %2351  ;;  %785 = vadd.xlane.f32.xlu0 %v784_v17 }
 0x6fe   :  { %v787_v22 = vsel %vm650_vm9, %v2352_v21, 0.0 }
 0x701   :  { %788 = vadd.xlane.f32.xlu0 %v787_v22 }
 0x717   :  { %845 = vrot.lane.b32.xlu0 %v2871_v23, %s2621_s18 }
 0x71b   :  { %843 = vrot.lane.b32.xlu0 %v2867_v18, %s2621_s18 }
 0x78a   :  { %v786_v24 = vpop.xlane.xlu0 %785 }
 0x78b   :  { %2353 = vrcp.f32 %v786_v24 }
 0x78e   :  { %v789_v25 = vpop.xlane.xlu0 %788 }
 0x78f   :  { %2355 = vrcp.f32 %v789_v25 }
 0x792   :  { %v846_v32 = vpop.permute.xlu0 %845 }
 0x793   :  { %v851_v35 = vsel %vm602_vm7, %v846_v32, 0 }
 0x795   :  { %v2354_v26 = vpop.eup %2353 }
 0x796   :  { %v792_v30 = vmul.f32 %v2354_v26, %v2350_v16  ;;  %v844_v36 = vpop.permute.xlu0 %843 }
 0x799   :  { %v2356_v29 = vpop.eup %2355 }
 0x79a   :  { %v793_v31 = vmul.f32 %v2356_v29, %v2352_v21 }
 0x79c   :  { %v794_v33 = vpack.c.bf16 %v793_v31, %v792_v30 }
 0x79e   :  { %2099 = vmatmul.mubr.msk.bf16.vlgmr.msra.gmra.mrb[16].mxu1 %vm650_vm9, %v794_v33 }
 0x79f   :  { %2103 = vmatpush3.bf16.xpose.msra.mxu1 %v851_v35  ;;  %2104 = vmatprep.mubr.msk.bf16.mxu1 %vm2629_vm6, %v2628_v27 }
 0x7a0   :  { %2108 = vmatprep.subr.bf16.mxu1 %v2628_v27 }
 0x7a6   :  { %2105 = vmatmul.mubr.msk.bf16.vlgmr.msra.gmra.mrb[20].mxu1 %vm602_vm7, %v844_v36 }
 0x7a7   :  { %2110 = vmatprep.mubr.msk.bf16.mxu1 %vm2629_vm6, %v2628_v27 }
 0x871   :  { %v2931_v38 = vpop.f32.mrb[16].mxu1 }
 0x872   :  { %v2100_v39 = vpop.f32.mrb[17].mxu1 }
 0x873   :  { %v2933_v20 = vpop.f32.mrb[18].mxu1 }
 0x874   :  { %v2210_v40 = vpack.i.bf16 %v2933_v20, %v2931_v38  ;;  %v2101_v41 = vpop.f32.mrb[19].mxu1  ;;  %v2274_v38 = vld [vmem:[#allocation9 + $0x8] sm:$0xff]   ;;  %v2275_v20 = vld [vmem:[#allocation9 + $0x10] sm:$0xff]  }
 0x879   :  { %v887_v42 = vpop.f32.mrb[20].mxu1 }
 0x87a   :  { %v888_v43 = vadd.f32 %v887_v42, %v2886_v28  ;;  %v2106_v44 = vpop.f32.mrb[21].mxu1 }
 0x87b   :  { %v890_v45 = vpop.f32.mrb[22].mxu1 }
 0x87c   :  { %v891_v46 = vadd.f32 %v890_v45, %v2886_v28  ;;  %v2107_v47 = vpop.f32.mrb[23].mxu1  ;;  %v894_v48 = vsel %vm650_vm9, %v888_v43, -inf }
 0x87d   :  { %895 = vmax.xlane.f32.xlu1 %v894_v48 }
 0x87e   :  { %v897_v49 = vsel %vm650_vm9, %v891_v46, -inf }
 0x87f   :  { %898 = vmax.xlane.f32.xlu0 %v897_v49 }
 0x88e   :  { %917 = vrot.lane.b32.xlu1 %v2869_v19, %s2621_s18 }
 0x90a   :  { %v896_v50 = vpop.xlane.xlu1 %895 }
 0x90b   :  { %v900_v51 = vsub.f32 %v888_v43, %v896_v50  ;;  %v2277_v50 = vld [vmem:[#allocation9 + $0x20] sm:$0xff]  }
 0x90c   :  { %v899_v52 = vpop.xlane.xlu0 %898 }
 0x90d   :  { %v902_v53 = vmul.f32 1.442695, %v900_v51  ;;  %v901_v54 = vsub.f32 %v891_v46, %v899_v52  ;;  %v2278_v51 = vld [vmem:[#allocation9 + $0x28] sm:$0xff]   ;;  %v2280_v52 = vld [vmem:[#allocation9 + $0x38] sm:$0xff]  }
 0x90e   :  { %v918_v55 = vpop.permute.xlu1 %917 }
 0x90f   :  { %2357 = vpow2.f32 %v902_v53  ;;  %v904_v56 = vmul.f32 1.442695, %v901_v54  ;;  %2109 = vmatpush3.bf16.msra.mxu1 %v918_v55 }
 0x910   :  { %2114 = vmatprep.subr.bf16.mxu1 %v2628_v27 }
 0x911   :  { %2359 = vpow2.f32 %v904_v56 }
 0x919   :  { %v2358_v57 = vpop.eup %2357 }
 0x91a   :  { %v906_v59 = vsel %vm650_vm9, %v2358_v57, 0.0 }
 0x91b   :  { %v2360_v61 = vpop.eup %2359  ;;  %907 = vadd.xlane.f32.xlu1 %v906_v59 }
 0x91c   :  { %v909_v62 = vsel %vm650_vm9, %v2360_v61, 0.0 }
 0x91f   :  { %910 = vadd.xlane.f32.xlu1 %v909_v62 }
 0x930   :  { %966 = vrot.lane.b32.xlu1 %v2871_v23, %s2632_s26 }
 0x934   :  { %964 = vrot.lane.b32.xlu1 %v2867_v18, %s2632_s26 }
 0x9a8   :  { %v908_v63 = vpop.xlane.xlu1 %907 }
 0x9a9   :  { %2361 = vrcp.f32 %v908_v63 }
 0x9ac   :  { %v911_v2 = vpop.xlane.xlu1 %910 }
 0x9ad   :  { %2363 = vrcp.f32 %v911_v2 }
 0x9b0   :  { %v967_v8 = vpop.permute.xlu1 %966 }
 0x9b1   :  { %v972_v10 = vsel %vm602_vm7, %v967_v8, 0 }
 0x9b3   :  { %v2362_v3 = vpop.eup %2361 }
 0x9b4   :  { %v914_v6 = vmul.f32 %v2362_v3, %v2358_v57  ;;  %v965_v18 = vpop.permute.xlu1 %964 }
 0x9b7   :  { %v2364_v5 = vpop.eup %2363 }
 0x9b8   :  { %v915_v7 = vmul.f32 %v2364_v5, %v2360_v61 }
 0x9ba   :  { %v916_v9 = vpack.c.bf16 %v915_v7, %v914_v6 }
 0x9bc   :  { %2111 = vmatmul.mubr.msk.bf16.vlgmr.msra.gmra.mrb[24].mxu1 %vm650_vm9, %v916_v9 }
 0x9bd   :  { %2115 = vmatpush3.bf16.xpose.msra.mxu1 %v972_v10  ;;  %2116 = vmatprep.mubr.msk.bf16.mxu1 %vm2629_vm6, %v2628_v27 }
 0x9be   :  { %2120 = vmatprep.subr.bf16.mxu1 %v2628_v27 }
 0x9c4   :  { %2117 = vmatmul.mubr.msk.bf16.vlgmr.msra.gmra.mrb[28].mxu1 %vm602_vm7, %v965_v18 }
 0x9c5   :  { %2122 = vmatprep.mubr.msk.bf16.mxu1 %vm2629_vm6, %v2628_v27 }
 0xa8f   :  { %v957_v23 = vpop.f32.mrb[24].mxu1 }
 0xa90   :  { %v2112_v11 = vpop.f32.mrb[25].mxu1 }
 0xa91   :  { %v960_v12 = vpop.f32.mrb[26].mxu1 }
 0xa92   :  { %v2215_v13 = vpack.i.bf16 %v960_v12, %v957_v23  ;;  %v2113_v14 = vpop.f32.mrb[27].mxu1 }
 0xa93   :  { %v2283_v14 = vld [vmem:[#allocation10 + $0x4] ss:$8 sps:$4 sm:$0xff]  }
 0xa97   :  { %v1008_v15 = vpop.f32.mrb[28].mxu1 }
 0xa98   :  { %v1009_v16 = vadd.f32 %v1008_v15, %v2886_v28  ;;  %v2118_v17 = vpop.f32.mrb[29].mxu1  ;;  %v2286_v15 = vld [vmem:[#allocation10 + $0x14] ss:$8 sps:$4 sm:$0xff]  }
 0xa99   :  { %v1011_v21 = vpop.f32.mrb[30].mxu1  ;;  %v2289_v17 = vld [vmem:[#allocation10 + $0x24] ss:$8 sps:$4 sm:$0xff]  }
 0xa9a   :  { %v1012_v22 = vadd.f32 %v1011_v21, %v2886_v28  ;;  %v2119_v24 = vpop.f32.mrb[31].mxu1  ;;  %v1015_v25 = vsel %vm650_vm9, %v1009_v16, -inf }
 0xa9b   :  { %1016 = vmax.xlane.f32.xlu0 %v1015_v25 }
 0xa9c   :  { %v1018_v26 = vsel %vm650_vm9, %v1012_v22, -inf }
 0xa9d   :  { %1019 = vmax.xlane.f32.xlu1 %v1018_v26 }
 0xb28   :  { %v1017_v29 = vpop.xlane.xlu0 %1016 }
 0xb29   :  { %v1021_v30 = vsub.f32 %v1009_v16, %v1017_v29  ;;  %v2284_v16 = vld [vmem:[#allocation10 + $0x10] ss:$8 sps:$4 sm:$0xff]  }
 0xb2a   :  { %v1020_v31 = vpop.xlane.xlu1 %1019 }
 0xb2b   :  { %v1023_v32 = vmul.f32 1.442695, %v1021_v30  ;;  %v1022_v33 = vsub.f32 %v1012_v22, %v1020_v31  ;;  %v2292_v31 = vld [vmem:[#allocation10 + $0x34] ss:$8 sps:$4 sm:$0xff]  }
 0xb2d   :  { %2365 = vpow2.f32 %v1023_v32  ;;  %v1025_v35 = vmul.f32 1.442695, %v1022_v33  ;;  %v2290_v32 = vld [vmem:[#allocation10 + $0x30] ss:$8 sps:$4 sm:$0xff]   ;;  %v2295_v33 = vld [vmem:[#allocation10 + $0x44] ss:$8 sps:$4 sm:$0xff]  }
 0xb2f   :  { %2367 = vpow2.f32 %v1025_v35  ;;  %v2298_v35 = vld [vmem:[#allocation10 + $0x54] ss:$8 sps:$4 sm:$0xff]  }
 0xb37   :  { %v2366_v36 = vpop.eup %2365 }
 0xb38   :  { %v1027_v39 = vsel %vm650_vm9, %v2366_v36, 0.0 }
 0xb39   :  { %v2368_v41 = vpop.eup %2367  ;;  %1028 = vadd.xlane.f32.xlu0 %v1027_v39  ;;  %v2299_v39 = vld [vmem:[#allocation10 + $0x60] ss:$8 sps:$4 sm:$0xff]  }
 0xb3a   :  { %v1030_v28 = vsel %vm650_vm9, %v2368_v41, 0.0 }
 0xb3d   :  { %1031 = vadd.xlane.f32.xlu0 %v1030_v28  ;;  %v2302_v28 = vld [vmem:[#allocation10 + $0x70] ss:$8 sps:$4 sm:$0xff]  }
 0xb53   :  { %1038 = vrot.lane.b32.xlu0 %v2869_v19, %s2632_s26  ;;  %v2273_v19 = vld [vmem:[#allocation9] sm:$0xff]  }
 0xb54   :  { %2127 = vmatpush3.bf16.msra.mxu0 %v2273_v19  ;;  %v2313_v19 = vld [vmem:[#allocation12 + $0x60] sm:$0xff]  }
 0xb55   :  { %2128 = vmatprep.subr.bf16.mxu0 %v2628_v27 }
 0xb57   :  { %2211 = vrot.lane.b32.xlu0 %v2210_v40, %s2632_s26  ;;  %v2276_v40 = vld [vmem:[#allocation9 + $0x18] sm:$0xff]  }
 0xb58   :  { %2129 = vmatpush3.bf16.msra.mxu0 %v2274_v38  ;;  %v2314_v38 = vld [vmem:[#allocation12 + $0x20] sm:$0xff]  }
 0xb59   :  { %2130 = vmatprep.subr.bf16.mxu0 %v2628_v27 }
 0xb5b   :  { %2216 = vrot.lane.b32.xlu0 %v2215_v13, %s2621_s18  ;;  %v2281_v13 = vld [vmem:[#allocation10] ss:$8 sps:$4 sm:$0xff]   ;;  %s2633_s18 = smov [#allocation16]  }
 0xb5c   :  { %2131 = vmatpush3.bf16.msra.mxu0 %v2275_v20  ;;  %v2315_v20 = vld [vmem:[#allocation12 + $0x68] sm:$0xff]   ;;  %s1804_s27 = sshll.u32 %s2633_s18, 4  ;;  %s1805_s27 = int_to_ptr.vmem [resolvable:$true] %s1804_s27 }
 0xb5d   :  { %2132 = vmatprep.subr.bf16.mxu0 %v2628_v27  ;;  %s2535_s5 = scalar_lea.vmem %s1805_s27, 256  ;;  %p2540_p1 = scmp.lt.s32.totalorder %s1805_s27, %s1805_s27 }
 0xb5e   :  { %p2536_p0 = scmp.ne.s32.totalorder %s1805_s27, %s2535_s5  ;;  %p2541_p2 = scmp.lt.s32.totalorder %s2535_s5, %s2535_s5 }
 0xb60   :  { %2133 = vmatpush3.bf16.msra.mxu0 %v2276_v40  ;;  %v2316_v40 = vld [vmem:[#allocation12 + $0x28] sm:$0xff]   ;;  %p2542_p3 = por %p2541_p2, %p2540_p1 }
 0xb61   :  { %2134 = vmatprep.subr.bf16.mxu0 %v2628_v27 }
 0xb62   :  { %p2543_p4 = pnand %p2542_p3, %p2536_p0 }
 0xb64   :  { %2135 = vmatpush3.bf16.msra.mxu0 %v2277_v50 }
 0xb65   :  { %2136 = vmatprep.subr.bf16.mxu0 %v2628_v27 }
 0xb68   :  { %2137 = vmatpush3.bf16.msra.mxu0 %v2278_v51 }
 0xb69   :  { %2138 = vmatprep.subr.bf16.mxu0 %v2628_v27 }
 0xbc6   :  { %v1029_v42 = vpop.xlane.xlu0 %1028 }
 0xbc7   :  { %2369 = vrcp.f32 %v1029_v42  ;;  %v2305_v42 = vld [vmem:[#allocation12 + $0x40] sm:$0xff]  }
 0xbca   :  { %v1032_v43 = vpop.xlane.xlu0 %1031 }
 0xbcb   :  { %2371 = vrcp.f32 %v1032_v43  ;;  %v2306_v43 = vld [vmem:[#allocation12] sm:$0xff]  }
 0xbce   :  { %v1039_v44 = vpop.permute.xlu0 %1038 }
 0xbcf   :  { %2121 = vmatpush3.bf16.msra.mxu1 %v1039_v44  ;;  %v2307_v44 = vld [vmem:[#allocation12 + $0x48] sm:$0xff]  }
 0xbd0   :  { %1342 = vmatprep.subr.bf16.mxu1 %v2283_v14 }
 0xbd1   :  { %v2370_v45 = vpop.eup %2369 }
 0xbd2   :  { %v1035_v47 = vmul.f32 %v2370_v45, %v2366_v36  ;;  %v2212_v59 = vpop.permute.xlu0 %2211  ;;  %v2301_v36 = vld [vmem:[#allocation10 + $0x64] ss:$8 sps:$4 sm:$0xff]  }
 0xbd3   :  { %v2214_v62 = vunpack.i.h.bf16 %v2212_v59  ;;  %v2213_v63 = vunpack.i.l.bf16 %v2212_v59  ;;  %v2308_v45 = vld [vmem:[#allocation12 + $0x8] sm:$0xff]  }
 0xbd5   :  { %v2372_v46 = vpop.eup %2371  ;;  %v1110_v6 = vsel %vm602_vm7, %v2908_v60, %v2214_v62  ;;  %v1109_v7 = vsel %vm602_vm7, %v2906_v58, %v2213_v63  ;;  %v2287_v60 = vld [vmem:[#allocation10 + $0x20] ss:$8 sps:$4 sm:$0xff]  }
 0xbd6   :  { %v1036_v48 = vmul.f32 %v2372_v46, %v2368_v41  ;;  %v2217_v61 = vpop.permute.xlu0 %2216  ;;  %v2304_v41 = vld [vmem:[#allocation10 + $0x74] ss:$8 sps:$4 sm:$0xff]  }
 0xbd7   :  { %v2219_v2 = vunpack.i.h.bf16 %v2217_v61  ;;  %v2218_v3 = vunpack.i.l.bf16 %v2217_v61  ;;  %v2309_v46 = vld [vmem:[#allocation12 + $0x50] sm:$0xff]  }
 0xbd8   :  { %v1037_v49 = vpack.c.bf16 %v1036_v48, %v1035_v47  ;;  %v2310_v47 = vld [vmem:[#allocation12 + $0x10] sm:$0xff]   ;;  %v2311_v48 = vld [vmem:[#allocation12 + $0x58] sm:$0xff]  }
 0xbd9   :  { %v1112_v10 = vsel %vm1111_vm10, %v1109_v7, %v2218_v3  ;;  %v1113_v18 = vsel %vm1111_vm10, %v1110_v6, %v2219_v2  ;;  %v2318_v6 = vld [vmem:[#allocation12 + $0x30] sm:$0xff]   ;;  %v2319_v7 = vld [vmem:[#allocation12 + $0x78] sm:$0xff]  }
 0xbda   :  { %2123 = vmatmul.mubr.msk.bf16.vlgmr.msra.gmra.mrb[32].mxu1 %vm650_vm9, %v1037_v49  ;;  %v2312_v49 = vld [vmem:[#allocation12 + $0x18] sm:$0xff]  }
 0xbdb   :  { %1374 = vmatprep.mubr.bf16.mxu1 %v2626_v0  ;;  %v2279_v0 = vld [vmem:[#allocation9 + $0x30] sm:$0xff]   ;;  %1343 = vmatpush1.bf16.msra.mxu1 %v2281_v13 }
 0xbdc   :  { %2139 = vmatpush3.bf16.msra.mxu0 %v2279_v0  ;;  %1344 = vmatprep.subr.bf16.mxu1 %v2286_v15 }
 0xbdd   :  { %2140 = vmatprep.subr.bf16.mxu0 %v2628_v27 }
 0xbdf   :  { %1345 = vmatpush1.bf16.msra.mxu1 %v2284_v16 }
 0xbe0   :  { %2141 = vmatpush3.bf16.msra.mxu0 %v2280_v52  ;;  %1346 = vmatprep.subr.bf16.mxu1 %v2289_v17  ;;  %v2321_v17 = vld [vmem:[#allocation13] sm:$0xff]  }
 0xbe1   :  { %2018 = vmatprep.subr.bf16.mxu0 %v2305_v42  ;;  %v2331_v42 = vld [vmem:[#allocation13 + $0x28] sm:$0xff]  }
 0xbe3   :  { %1347 = vmatpush1.bf16.msra.mxu1 %v2287_v60  ;;  %v2322_v60 = vld [vmem:[#allocation15] sm:$0xff]  }
 0xbe4   :  { %1348 = vmatprep.subr.bf16.mxu1 %v2292_v31 }
 0xbe7   :  { %1349 = vmatpush1.bf16.msra.mxu1 %v2290_v32 }
 0xbe8   :  { %1350 = vmatprep.subr.bf16.mxu1 %v2295_v33 }
 0xcad   :  { %v1078_v53 = vpop.f32.mrb[32].mxu1 }
 0xcae   :  { %v2124_v54 = vpop.f32.mrb[33].mxu1 }
 0xcaf   :  { %v1081_v55 = vpop.f32.mrb[34].mxu1 }
 0xcb0   :  { %v2220_v56 = vpack.i.bf16 %v1081_v55, %v1078_v53  ;;  %v2125_v57 = vpop.f32.mrb[35].mxu1  ;;  %v1241_v55 = vsub.s32 1, %v2852_v1 }
 0xcb2   :  { %2221 = vrot.lane.b32.xlu1 %v2220_v56, %s2631_s0  ;;  %v1242_v59 = vrot.slane %v2858_v4, %v1241_v55 }
 0xd24   :  { %v2222_v5 = vpop.permute.xlu1 %2221 }
 0xd25   :  { %v2224_v8 = vunpack.i.h.bf16 %v2222_v5  ;;  %v2223_v9 = vunpack.i.l.bf16 %v2222_v5  ;;  %v2317_v5 = vld [vmem:[#allocation12 + $0x70] sm:$0xff]  }
 0xd27   :  { %v1116_v23 = vsel %vm1114_vm11, %v1113_v18, %v2224_v8  ;;  %v1115_v11 = vsel %vm1114_vm11, %v1112_v10, %v2223_v9  ;;  %v2320_v8 = vld [vmem:[#allocation12 + $0x38] sm:$0xff]  }
 0xd28   :  { %v1117_v12 = vpack.c.bf16 %v1116_v23, %v1115_v11 }
 0xd2a   :  { %2143 = vmatmul.mubr.bf16.vlgmr.msra.gmra.mrb[8].mxu0 %v1117_v12 }
 0xd2b   :  { %2019 = vmatpush3.bf16.msra.mxu0 %v2306_v43  ;;  %v2332_v43 = vld [vmem:[#allocation15 + $0x28] sm:$0xff]  }
 0xd2c   :  { %2020 = vmatprep.subr.bf16.mxu0 %v2307_v44  ;;  %v2333_v44 = vld [vmem:[#allocation13 + $0x30] sm:$0xff]  }
 0xd2f   :  { %2021 = vmatpush3.bf16.msra.mxu0 %v2308_v45  ;;  %v2334_v45 = vld [vmem:[#allocation15 + $0x30] sm:$0xff]  }
 0xd30   :  { %2022 = vmatprep.subr.bf16.mxu0 %v2309_v46  ;;  %v2335_v46 = vld [vmem:[#allocation13 + $0x38] sm:$0xff]  }
 0xd33   :  { %2023 = vmatpush3.bf16.msra.mxu0 %v2310_v47  ;;  %v2336_v47 = vld [vmem:[#allocation15 + $0x38] sm:$0xff]  }
 0xd34   :  { %2024 = vmatprep.subr.bf16.mxu0 %v2311_v48 }
 0xd37   :  { %2025 = vmatpush3.bf16.msra.mxu0 %v2312_v49 }
 0xd38   :  { %2026 = vmatprep.subr.bf16.mxu0 %v2313_v19 }
 0xd3b   :  { %2027 = vmatpush3.bf16.msra.mxu0 %v2314_v38 }
 0xd3c   :  { %2028 = vmatprep.subr.bf16.mxu0 %v2315_v20 }
 0xd3f   :  { %2029 = vmatpush3.bf16.msra.mxu0 %v2316_v40 }
 0xd40   :  { %2030 = vmatprep.subr.bf16.mxu0 %v2317_v5 }
 0xd43   :  { %2031 = vmatpush3.bf16.msra.mxu0 %v2318_v6 }
 0xd44   :  { %2032 = vmatprep.subr.bf16.mxu0 %v2319_v7 }
 0xd47   :  { %2033 = vmatpush3.bf16.msra.mxu0 %v2320_v8 }
 0xd48   :  { %2166 = vmatprep.subr.bf16.mxu0 %v2628_v27 }
 0xdfd   :  { %v1216_v58 = vpop.f32.mrb[8].mxu0 }
 0xdfe   :  { %v2986_v21 = vadd.f32 %v2834_v34, %v1216_v58  ;;  %v2144_v22 = vpop.f32.mrb[9].mxu0  ;;  %v2293_v34 = vld [vmem:[#allocation10 + $0x40] ss:$8 sps:$4 sm:$0xff]  }
 0xdff   :  { %v1219_v24 = vpop.f32.mrb[10].mxu0  ;;  %1351 = vmatpush1.bf16.msra.mxu1 %v2293_v34  ;;  %v2323_v58 = vld [vmem:[#allocation13 + $0x8] sm:$0xff]  }
 0xe00   :  { %v2989_v25 = vadd.f32 %v2836_v37, %v1219_v24  ;;  %v2145_v26 = vpop.f32.mrb[11].mxu0  ;;  %v1225_v29 = vmul.f32 %v2986_v21, %v2986_v21  ;;  %v2296_v37 = vld [vmem:[#allocation10 + $0x50] ss:$8 sps:$4 sm:$0xff]   ;;  %1352 = vmatprep.subr.bf16.mxu1 %v2298_v35  ;;  %v2324_v22 = vld [vmem:[#allocation15 + $0x8] sm:$0xff]  }
 0xe02   :  { %1227 = vadd.xlane.f32.xlu0 %v1225_v29  ;;  %v1226_v30 = vmul.f32 %v2989_v25, %v2989_v25 }
 0xe03   :  { %1353 = vmatpush1.bf16.msra.mxu1 %v2296_v37 }
 0xe04   :  { %1229 = vadd.xlane.f32.xlu1 %v1226_v30  ;;  %1354 = vmatprep.subr.bf16.mxu1 %v2301_v36  ;;  %v2325_v36 = vld [vmem:[#allocation13 + $0x10] sm:$0xff]  }
 0xe07   :  { %1355 = vmatpush1.bf16.msra.mxu1 %v2299_v39  ;;  %v2326_v39 = vld [vmem:[#allocation15 + $0x10] sm:$0xff]  }
 0xe08   :  { %1356 = vmatprep.subr.bf16.mxu1 %v2304_v41  ;;  %v2327_v41 = vld [vmem:[#allocation13 + $0x18] sm:$0xff]  }
 0xe0b   :  { %1357 = vmatpush1.bf16.msra.mxu1 %v2302_v28  ;;  %v2328_v28 = vld [vmem:[#allocation15 + $0x18] sm:$0xff]  }
 0xe0c   :  { %2146 = vmatprep.subr.bf16.mxu1 %v2628_v27 }
 0xe8f   :  { %v1228_v50 = vpop.xlane.xlu0 %1227 }
 0xe90   :  { %v1231_v51 = vmul.f32 0.0078125, %v1228_v50  ;;  %v1578_v50 = vsub.s32 2, %v2852_v1 }
 0xe91   :  { %v1230_v0 = vpop.xlane.xlu1 %1229 }
 0xe92   :  { %v1233_v52 = vadd.f32 1e-06, %v1231_v51  ;;  %v1232_v53 = vmul.f32 0.0078125, %v1230_v0  ;;  %v1579_v51 = vrot.slane %v2858_v4, %v1578_v50 }
 0xe94   :  { %2373 = vrsqrt.f32 %v1233_v52  ;;  %v1234_v54 = vadd.f32 1e-06, %v1232_v53 }
 0xe96   :  { %2375 = vrsqrt.f32 %v1234_v54 }
 0xe9e   :  { %v2374_v56 = vpop.eup %2373 }
 0xe9f   :  { %v1237_v57 = vmul.f32 %v2374_v56, %v2986_v21 }
 0xea0   :  { %v2376_v61 = vpop.eup %2375 }
 0xea1   :  { %v1238_v62 = vmul.f32 %v2376_v61, %v2989_v25  ;;  %v1243_v63 = vmul.f32 %v1242_v59, %v1237_v57 }
 0xea3   :  { %v1244_v2 = vmul.f32 %v1242_v59, %v1238_v62 }
 0xea5   :  { %v1261_v3 = vpack.c.bf16 %v1244_v2, %v1243_v63 }
 0xea7   :  { %1375 = vmatmul.mubr.bf16.vlgmr.msra.gmra.mrb[36].mxu1 %v1261_v3 }
 0xea8   :  { %2162 = vmatprep.mubr.msk.bf16.mxu1 %vm2629_vm6, %v2628_v27  ;;  %2147 = vmatpush3.bf16.msra.mxu1 %v2321_v17 }
 0xea9   :  { %2148 = vmatprep.subr.bf16.mxu1 %v2628_v27 }
 0xeac   :  { %2149 = vmatpush3.bf16.msra.mxu1 %v2323_v58 }
 0xead   :  { %2150 = vmatprep.subr.bf16.mxu1 %v2628_v27 }
 0xeb0   :  { %2151 = vmatpush3.bf16.msra.mxu1 %v2325_v36 }
 0xeb1   :  { %2152 = vmatprep.subr.bf16.mxu1 %v2628_v27 }
 0xeb4   :  { %2153 = vmatpush3.bf16.msra.mxu1 %v2327_v41 }
 0xeb5   :  { %2154 = vmatprep.subr.bf16.mxu1 %v2628_v27 }
 0xf7a   :  { %v1376_v9 = vpop.f32.mrb[36].mxu1 }
 0xf7b   :  { %v1378_v10 = vpop.f32.mrb[37].mxu1  ;;  %v1385_v23 = vmax.f32 %v1376_v9, 0.0 }
 0xf7c   :  { %v1380_v18 = vpop.f32.mrb[38].mxu1  ;;  %v1386_v13 = vmax.f32 %v1378_v10, 0.0 }
 0xf7d   :  { %v1387_v11 = vmax.f32 %v1380_v18, 0.0  ;;  %v1382_v12 = vpop.f32.mrb[39].mxu1 }
 0xf7e   :  { %v1388_v14 = vmax.f32 %v1382_v12, 0.0 }
 0xf7f   :  { %v1421_v15 = vpack.c.bf16 %v1387_v11, %v1385_v23 }
 0xf80   :  { %v1422_v16 = vpack.c.bf16 %v1388_v14, %v1386_v13 }
 0xf82   :  { %1551 = vmatprep.mubr.bf16.mxu0 %v1422_v16 }
 0xf83   :  { %1552 = vmatmul.mubr.bf16.vlgmr.msra.gmra.mrb[12].mxu0 %v1421_v15 }
 0xf84   :  { %2182 = vmatprep.mubr.msk.bf16.mxu0 %vm2629_vm6, %v2628_v27  ;;  %2167 = vmatpush3.bf16.msra.mxu0 %v2322_v60 }
 0xf85   :  { %2168 = vmatprep.subr.bf16.mxu0 %v2628_v27 }
 0xf88   :  { %2169 = vmatpush3.bf16.msra.mxu0 %v2324_v22 }
 0xf89   :  { %2170 = vmatprep.subr.bf16.mxu0 %v2628_v27 }
 0xf8c   :  { %2171 = vmatpush3.bf16.msra.mxu0 %v2326_v39 }
 0xf8d   :  { %2172 = vmatprep.subr.bf16.mxu0 %v2628_v27 }
 0xf90   :  { %2173 = vmatpush3.bf16.msra.mxu0 %v2328_v28 }
 0xf91   :  { %2174 = vmatprep.subr.bf16.mxu0 %v2628_v27 }
0x1056   :  { %v2034_v24 = vpop.f32.mrb[12].mxu0 }
0x1057   :  { %v2035_v26 = vpop.f32.mrb[13].mxu0 }
0x1058   :  { %v2036_v29 = vadd.f32 %v2035_v26, %v2034_v24  ;;  %v2037_v30 = vpop.f32.mrb[14].mxu0 }
0x1059   :  { %v2038_v31 = vpop.f32.mrb[15].mxu0 }
0x105a   :  { %v1560_v32 = vadd.f32 %v2036_v29, %v2986_v21  ;;  %v2039_v34 = vadd.f32 %v2038_v31, %v2037_v30  ;;  %v2329_v21 = vld [vmem:[#allocation13 + $0x20] sm:$0xff]  }
0x105b   :  { %2155 = vmatpush3.bf16.msra.mxu1 %v2329_v21 }
0x105c   :  { %v1561_v33 = vadd.f32 %v2039_v34, %v2989_v25  ;;  %v1562_v35 = vmul.f32 %v1560_v32, %v1560_v32  ;;  %v2330_v25 = vld [vmem:[#allocation15 + $0x20] sm:$0xff]   ;;  %2156 = vmatprep.subr.bf16.mxu1 %v2628_v27 }
0x105d   :  { %2175 = vmatpush3.bf16.msra.mxu0 %v2330_v25 }
0x105e   :  { %1564 = vadd.xlane.f32.xlu0 %v1562_v35  ;;  %v1563_v37 = vmul.f32 %v1561_v33, %v1561_v33  ;;  %2176 = vmatprep.subr.bf16.mxu0 %v2628_v27 }
0x105f   :  { %2157 = vmatpush3.bf16.msra.mxu1 %v2331_v42 }
0x1060   :  { %2158 = vmatprep.subr.bf16.mxu1 %v2628_v27 }
0x1061   :  { %2177 = vmatpush3.bf16.msra.mxu0 %v2332_v43 }
0x1062   :  { %1566 = vadd.xlane.f32.xlu0 %v1563_v37  ;;  %2178 = vmatprep.subr.bf16.mxu0 %v2628_v27 }
0x1063   :  { %2159 = vmatpush3.bf16.msra.mxu1 %v2333_v44 }
0x1064   :  { %2160 = vmatprep.subr.bf16.mxu1 %v2628_v27 }
0x1065   :  { %2179 = vmatpush3.bf16.msra.mxu0 %v2334_v45 }
0x1066   :  { %2180 = vmatprep.subr.bf16.mxu0 %v2628_v27 }
0x1067   :  { %2161 = vmatpush3.bf16.msra.mxu1 %v2335_v46 }
0x1069   :  { %2181 = vmatpush3.bf16.msra.mxu0 %v2336_v47 }
0x10eb   :  { %v1565_v48 = vpop.xlane.xlu0 %1564 }
0x10ec   :  { %v1568_v49 = vmul.f32 0.0078125, %v1565_v48 }
0x10ee   :  { %v1570_v19 = vadd.f32 1e-06, %v1568_v49 }
0x10ef   :  { %v1567_v38 = vpop.xlane.xlu0 %1566 }
0x10f0   :  { %2377 = vrsqrt.f32 %v1570_v19  ;;  %v1569_v20 = vmul.f32 0.0078125, %v1567_v38 }
0x10f2   :  { %v1571_v40 = vadd.f32 1e-06, %v1569_v20 }
0x10f4   :  { %2379 = vrsqrt.f32 %v1571_v40 }
0x10fa   :  { %v2378_v0 = vpop.eup %2377 }
0x10fb   :  { %v1574_v52 = vmul.f32 %v2378_v0, %v1560_v32 }
0x10fd   :  { %v1580_v53 = vmul.f32 %v1579_v51, %v1574_v52 }
0x10fe   :  { %v2380_v54 = vpop.eup %2379 }
0x10ff   :  { %v1575_v55 = vmul.f32 %v2380_v54, %v1561_v33  ;;  %1582 = vst [vmem:[#allocation16] sm:$0xff] %v1580_v53 }
0x1101   :  { %v1581_v27 = vmul.f32 %v1579_v51, %v1575_v55 }
0x1103   :  { %v1600_v56 = vpack.c.bf16 %v1581_v27, %v1580_v53  ;;  %1583 = vst [vmem:[#allocation16 + $0x8] sm:$0xff] %v1581_v27 }
0x1105   :  { %2163 = vmatmul.mubr.bf16.vlgmr.msra.gmra.mrb[40].mxu1 %v1600_v56  ;;  %2183 = vmatmul.mubr.bf16.vlgmr.msra.gmra.mrb[16].mxu0 %v1600_v56 }
0x1106   :  { %2546 = shalt.err (!%p2543_p4)
}
0x1107   :  { %s2547_s29 = scalar_lea.hbm %s3085_s10, 256 }
0x1108   :  { %p2548_p5 = scmp.ne.s32.totalorder %s3085_s10, %s2547_s29  ;;  %p2551_p6 = scmp.lt.u32.totalorder %s2547_s29, %s3085_s10 }
0x110a   :  { %p2553_p7 = pnand %p2551_p6, %p2548_p5 }
0x110c   :  { %2556 = shalt.err (!%p2553_p7)
}
0x110d   :  { %1810 = dma.vmem_to_hbm [thread:$0]  %s1805_s27, 256, %s3085_s10, [#allocation6], %s2617_s4, %s2617_s4, %s2618_s22  }
0x110e   :  { %s2634_s19 = smov [#allocation17]   ;;  %s2635_s7 = smov [#allocation19]  }
0x110f   :  { %s1816_s20 = sshll.u32 %s2634_s19, 4  ;;  %s1828_s6 = sshll.u32 %s2635_s7, 4  ;;  %s1817_s20 = int_to_ptr.vmem [resolvable:$true] %s1816_s20  ;;  %s3038_s6 = int_to_ptr.vmem [resolvable:$true] %s1828_s6 }
0x1110   :  { %s2557_s10 = scalar_lea.vmem %s1817_s20, 256  ;;  %p2562_p9 = scmp.lt.s32.totalorder %s1817_s20, %s1817_s20 }
0x1111   :  { %p2558_p8 = scmp.ne.s32.totalorder %s1817_s20, %s2557_s10  ;;  %p2563_p10 = scmp.lt.s32.totalorder %s2557_s10, %s2557_s10 }
0x1113   :  { %p2564_p11 = por %p2563_p10, %p2562_p9 }
0x1115   :  { %p2565_p12 = pnand %p2564_p11, %p2558_p8 }
0x11d8   :  { %v1683_v1 = vpop.f32.mrb[40].mxu1  ;;  %v1790_v4 = vpop.f32.mrb[16].mxu0 }
0x11d9   :  { %1690 = vst [vmem:[#allocation17] sm:$0xff] %v1683_v1  ;;  %1797 = vst [vmem:[#allocation19] sm:$0xff] %v1790_v4  ;;  %v2164_v57 = vpop.f32.mrb[41].mxu1  ;;  %v2184_v59 = vpop.f32.mrb[17].mxu0 }
0x11da   :  { %v1686_v61 = vpop.f32.mrb[42].mxu1  ;;  %v1793_v62 = vpop.f32.mrb[18].mxu0 }
0x11db   :  { %1691 = vst [vmem:[#allocation17 + $0x8] sm:$0xff] %v1686_v61  ;;  %1798 = vst [vmem:[#allocation19 + $0x8] sm:$0xff] %v1793_v62  ;;  %v2165_v63 = vpop.f32.mrb[43].mxu1  ;;  %v2185_v2 = vpop.f32.mrb[19].mxu0 }
0x11dc   :  { %2568 = shalt.err (!%p2565_p12)
}
0x11dd   :  { %s2569_s21 = scalar_lea.hbm %s3086_s11, 256 }
0x11de   :  { %p2570_p13 = scmp.ne.s32.totalorder %s3086_s11, %s2569_s21  ;;  %p2573_p0 = scmp.lt.u32.totalorder %s2569_s21, %s3086_s11 }
0x11e0   :  { %p2575_p1 = pnand %p2573_p0, %p2570_p13 }
0x11e2   :  { %2578 = shalt.err (!%p2575_p1)
}
0x11e3   :  { %1822 = dma.vmem_to_hbm [thread:$0]  %s1817_s20, 256, %s3086_s11, [#allocation18], %s2617_s4, %s2617_s4, %s2618_s22  }
0x11e4   :  { %s2579_s26 = scalar_lea.vmem %s3038_s6, 256  ;;  %p2584_p3 = scmp.lt.s32.totalorder %s3038_s6, %s3038_s6 }
0x11e5   :  { %p2580_p2 = scmp.ne.s32.totalorder %s3038_s6, %s2579_s26  ;;  %p2585_p4 = scmp.lt.s32.totalorder %s2579_s26, %s2579_s26 }
0x11e7   :  { %p2586_p5 = por %p2585_p4, %p2584_p3 }
0x11e9   :  { %p2587_p6 = pnand %p2586_p5, %p2580_p2 }
0x11eb   :  { %2590 = shalt.err (!%p2587_p6)
}
0x11ec   :  { %s2591_s5 = scalar_lea.hbm %s3087_s12, 256 }
0x11ed   :  { %p2592_p7 = scmp.ne.s32.totalorder %s3087_s12, %s2591_s5  ;;  %p2595_p8 = scmp.lt.u32.totalorder %s2591_s5, %s3087_s12 }
0x11ef   :  { %p2597_p9 = pnand %p2595_p8, %p2592_p7 }
0x11f1   :  { %2600 = shalt.err (!%p2597_p9)
}
0x11f2   :  { %1834 = dma.vmem_to_hbm [thread:$0]  %s3038_s6, 256, %s3087_s12, [#allocation18], %s2617_s4, %s2617_s4, %s2618_s22  }
0x11f3   :  { %2609 = dma.done.wait [#allocation6], 256  }
0x11f4   :  { %2610 = vsyncadd [#allocation6], 4294967040 }
0x11f5   :  { %2611 = dma.done.wait [#allocation18], 512  }
0x11f6   :  { %2612 = vsyncadd [#allocation18], 4294966784 }
0x11f7   :  { %1844 = vsyncpa [#allocation5], 1 }
0x11f8   :  { %1845 = vsyncpa [#allocation8], 1 }
0x11f9   :  { %1846 = vsyncpa [#allocation11], 1 }
0x11fa   :  { %1847 = vsyncpa [#allocation14], 1 }
0x11fb   :  { %1848 = vsyncpa [#allocation6], 1 }
0x11fc   :  { %1849 = vsyncpa [#allocation18], 1 }

</bundles_post_ra>
